<compile_context>
chip_gen: v7x
topology: tpu7x:2x2x1
jax: 0.10.0
libtpu: 0.0.40
codegen_flags: <defaults>
</compile_context>

<pallas_src>
import jax
import jax.numpy as jnp
from jax import lax
from jax.experimental import pallas as pl
from jax.experimental.pallas import tpu as pltpu


# ------------------------------ helpers (host) --------------------------------
def _round_up(x, m):
    return ((x + m - 1) // m) * m


def _pad_gates(a, H, Hp):
    """Pad each of the 3 gate blocks (r, z, n) on the last axis from H to Hp."""
    if Hp == H:
        return a
    pad = [(0, 0)] * (a.ndim - 1) + [(0, Hp - H)]
    return jnp.concatenate(
        [jnp.pad(a[..., g * H:(g + 1) * H], pad) for g in range(3)], axis=-1)


def _pad_to(a, shape):
    return jnp.pad(a, [(0, s - d) for d, s in zip(a.shape, shape)])


# --------------------------- fused GRU stack kernel ----------------------------
def gru_stack_kernel(x_ref, wih_ref, whh_ref, bi_ref, bhn_ref, out_ref,
                     seq_ref, gi_ref):
    """One grid step == one GRU layer (grid=(L,), 'arbitrary').

    x_ref  : (T*Bp, Ip)  bf16  time-major embedded inputs (constant block, fetched once)
    wih_ref: (Ip, 3Hp)   bf16  this layer's input->gate weights (per-layer block)
    whh_ref: (Hp, 3Hp)   bf16  this layer's hidden->gate weights
    bi_ref : (1, 3Hp)    f32   folded gate bias: [b_ir+b_hr | b_iz+b_hz | b_in]
    bhn_ref: (1, Hp)     f32   hidden-side n-gate bias (b_hn)
    out_ref: (Bp, Hp)    bf16  last hidden state of the last layer (constant block)
    seq_ref: (T*Bp, Ip)  bf16  VMEM scratch: current layer's input/output sequence
    gi_ref : (T*Bp, 3Hp) f32   VMEM scratch: hoisted input->gate pre-activations
    """
    TB, Ip = seq_ref.shape
    Bp, Hp = out_ref.shape
    T = TB // Bp
    l = pl.program_id(0)

    # Layer 0: load the embedded input sequence into the resident seq scratch.
    @pl.when(l == 0)
    def _():
        seq_ref[...] = x_ref[...]

    # Hoisted input->gates projection for the whole sequence: ONE big MXU matmul per
    # layer (no sequential dependence).  r/z biases (both) and the input-side n bias
    # are folded into bi.
    if Ip == Hp:
        gi_ref[...] = (
            jnp.dot(seq_ref[...], wih_ref[...], preferred_element_type=jnp.float32)
            + bi_ref[...])
    else:
        @pl.when(l == 0)
        def _():
            gi_ref[...] = (
                jnp.dot(seq_ref[...], wih_ref[...],
                        preferred_element_type=jnp.float32)
                + bi_ref[...])

        @pl.when(l > 0)
        def _():
            # Layers >= 1 only have Hp meaningful input columns; skip the zero-padded
            # rows Hp..Ip (saves (Ip-Hp)/Ip of the MXU pushes).
            gi_ref[...] = (
                jnp.dot(seq_ref[:, :Hp], wih_ref[:Hp, :],
                        preferred_element_type=jnp.float32)
                + bi_ref[...])

    whh = whh_ref[...]                                    # (Hp, 3Hp) bf16, VMEM-resident
    bhn_b = jnp.broadcast_to(bhn_ref[...], (Bp, Hp))      # hoisted: JAX doesn't CSE this

    # TODO(synk): if Hp <= 256, hold W_hh in MXU staging across timesteps
    # (pltpu.matmul_push_rhs / matmul_acc_lhs) to avoid T-1 redundant RHS pushes.
    def step(t, h):
        row = pl.multiple_of(t * Bp, 16)                  # Bp % 16 == 0 -> tile-aligned
        gi = gi_ref[pl.ds(row, Bp), :]                    # (Bp, 3Hp) f32
        gh = jnp.dot(h.astype(jnp.bfloat16), whh,
                     preferred_element_type=jnp.float32)  # (Bp, 3Hp) f32
        # Lane-aligned gate slices (offsets 0, Hp, 2Hp are multiples of 128).
        i_r, i_z, i_n = gi[:, :Hp], gi[:, Hp:2 * Hp], gi[:, 2 * Hp:]
        h_r, h_z, h_n = gh[:, :Hp], gh[:, Hp:2 * Hp], gh[:, 2 * Hp:]
        r = jax.nn.sigmoid(i_r + h_r)                     # r/z biases folded into gi
        z = jax.nn.sigmoid(i_z + h_z)
        n = jnp.tanh(i_n + r * (h_n + bhn_b))
        h_new = n + z * (h - n)                           # == (1 - z) * n + z * h
        # This layer's output sequence becomes the next layer's input.
        seq_ref[pl.ds(row, Bp), :Hp] = h_new.astype(jnp.bfloat16)
        return h_new

    # Partial unroll keeps LLO scheduling visibility without exploding instruction
    # memory / vreg live ranges at large T.
    h_last = lax.fori_loop(0, T, step, jnp.zeros((Bp, Hp), jnp.float32),
                           unroll=min(T, 8))

    out_ref[...] = h_last.astype(out_ref.dtype)


def gru_stack(x_flat, wih, whh, bi, bhn, *, batch_p):
    TB, Ip = x_flat.shape
    L, Hp, H3 = whh.shape

    # Explicit VMEM budget: resident scratch + double-buffered per-layer weights + I/O.
    scratch_bytes = TB * Ip * 2 + TB * H3 * 4
    per_layer_w = (Ip * H3 + Hp * H3) * 2 + (H3 + Hp) * 4
    resident = scratch_bytes + 2 * per_layer_w + TB * Ip * 2 + 2 * batch_p * Hp * 2
    vmem_limit = int(min(max(2 * resident, 32 << 20), 64 << 20))

    return pl.pallas_call(
        gru_stack_kernel,
        out_shape=jax.ShapeDtypeStruct((batch_p, Hp), jnp.bfloat16),
        grid_spec=pltpu.PrefetchScalarGridSpec(
            num_scalar_prefetch=0,
            grid=(L,),
            in_specs=[
                pl.BlockSpec((TB, Ip), lambda l: (0, 0)),          # x: fetched once
                pl.BlockSpec((None, Ip, H3), lambda l: (l, 0, 0)),  # per-layer weights
                pl.BlockSpec((None, Hp, H3), lambda l: (l, 0, 0)),
                pl.BlockSpec((None, 1, H3), lambda l: (l, 0, 0)),
                pl.BlockSpec((None, 1, Hp), lambda l: (l, 0, 0)),
            ],
            out_specs=pl.BlockSpec((batch_p, Hp), lambda l: (0, 0)),
            scratch_shapes=[
                pltpu.VMEM((TB, Ip), jnp.bfloat16),   # layer input/output sequence
                pltpu.VMEM((TB, H3), jnp.float32),    # hoisted gate pre-activations
                # TODO(synk): for very long T, chunk gi over time (or store it bf16) so
                # it stays inside v7x's 64 MiB VMEM.
            ],
        ),
        compiler_params=pltpu.CompilerParams(
            dimension_semantics=("arbitrary",),        # layers are a sequential chain
            vmem_limit_bytes=vmem_limit,
        ),
    )(x_flat, wih, whh, bi, bhn)


# ------------------------------- FC (Linear) -----------------------------------
def fc_kernel(h_ref, w_ref, b_ref, o_ref):
    o_ref[...] = (
        jnp.dot(h_ref[...], w_ref[...], preferred_element_type=jnp.float32)
        + b_ref[...])


def fc_layer(h_last, w_bf16, b_f32, tn):
    """Vocab-tiled linear: grid over the (padded) vocab dimension, 'parallel'."""
    Bp, Hp = h_last.shape
    Vp = w_bf16.shape[1]
    return pl.pallas_call(
        fc_kernel,
        out_shape=jax.ShapeDtypeStruct((Bp, Vp), jnp.float32),
        grid=(Vp // tn,),
        in_specs=[
            pl.BlockSpec((Bp, Hp), lambda j: (0, 0)),
            pl.BlockSpec((Hp, tn), lambda j: (0, j)),
            pl.BlockSpec((1, tn), lambda j: (0, j)),
        ],
        out_specs=pl.BlockSpec((Bp, tn), lambda j: (0, j)),
        compiler_params=pltpu.CompilerParams(dimension_semantics=("parallel",)),
    )(h_last, w_bf16, b_f32)


# ----------------------------- param preparation -------------------------------
def init_params(key, vocab_size, embed_size, hidden_size, num_layers):
    """Logical f32 params, PyTorch layout (gate order r, z, n; weights pre-transposed)."""
    keys = jax.random.split(key, 3 + 4 * num_layers)
    params = {
        "embedding": jax.random.normal(keys[0], (vocab_size, embed_size), jnp.float32),
        "fc_w_t": 0.1 * jax.random.normal(keys[1], (hidden_size, vocab_size), jnp.float32),
        "fc_b": 0.1 * jax.random.normal(keys[2], (1, vocab_size), jnp.float32),
        "gru_layers": [],
    }
    for layer in range(num_layers):
        in_size = embed_size if layer == 0 else hidden_size
        k = keys[3 + 4 * layer: 3 + 4 * (layer + 1)]
        params["gru_layers"].append({
            "wih_t": 0.1 * jax.random.normal(k[0], (in_size, 3 * hidden_size), jnp.float32),
            "whh_t": 0.1 * jax.random.normal(k[1], (hidden_size, 3 * hidden_size), jnp.float32),
            "bih": 0.1 * jax.random.normal(k[2], (1, 3 * hidden_size), jnp.float32),
            "bhh": 0.1 * jax.random.normal(k[3], (1, 3 * hidden_size), jnp.float32),
        })
    return params


def prepare_kernel_params(params, batch):
    """Pad to lane/sublane-friendly shapes, fold biases, cast MXU operands to bf16.

    Correctness invariant: every pad element (gate columns H..Hp, weight rows E..Ip /
    H..Hp, bias pad lanes, FC weight rows H..Hp) is exactly zero and the initial hidden
    state is zero, so the padded hidden lanes stay exactly 0 through the recurrence
    (r = z = 0.5 but n = 0 -> h stays 0) and contribute nothing to the logits.
    This breaks if a nonzero initial hidden state is ever supported.
    """
    emb = params["embedding"]
    V, E = emb.shape
    layers = params["gru_layers"]
    L = len(layers)
    H = layers[0]["whh_t"].shape[0]
    Hp = _round_up(H, 128)
    Ep = _round_up(E, 128)
    Ip = max(Ep, Hp)               # seq scratch holds layer-0 (Ep) and hidden (Hp) seqs
    Bp = _round_up(batch, 16)      # bf16 sublane tile + fatter recurrent-matmul M
    fc_tile = 2048 if V >= 2048 else _round_up(V, 256)
    Vp = _round_up(V, fc_tile)

    wih_s, whh_s, bi_s, bhn_s = [], [], [], []
    for layer in layers:
        wih = _pad_to(_pad_gates(layer["wih_t"], H, Hp), (Ip, 3 * Hp))
        whh = _pad_to(_pad_gates(layer["whh_t"], H, Hp), (Hp, 3 * Hp))
        bih, bhh = layer["bih"], layer["bhh"]
        bi = jnp.concatenate(
            [bih[:, :H] + bhh[:, :H],               # r: fold both biases
             bih[:, H:2 * H] + bhh[:, H:2 * H],     # z: fold both biases
             bih[:, 2 * H:]],                       # n: input-side bias only
            axis=-1)
        wih_s.append(wih.astype(jnp.bfloat16))
        whh_s.append(whh.astype(jnp.bfloat16))
        bi_s.append(_pad_gates(bi, H, Hp))
        bhn_s.append(_pad_to(bhh[:, 2 * H:], (1, Hp)))

    return {
        "embedding": _pad_to(emb, (V, Ip)).astype(jnp.bfloat16),
        "wih": jnp.stack(wih_s), "whh": jnp.stack(whh_s),
        "bi": jnp.stack(bi_s), "bhn": jnp.stack(bhn_s),
        "fc_w": _pad_to(params["fc_w_t"], (Hp, Vp)).astype(jnp.bfloat16),
        "fc_b": _pad_to(params["fc_b"], (1, Vp)),
        "V": V, "H": H, "Hp": Hp, "Ip": Ip, "Vp": Vp, "Bp": Bp, "L": L,
        "fc_tile": fc_tile,
    }


# ------------------------------ full forward ------------------------------------
def embed_tokens(tokens, kp):
    """Time-major embedding lookup, padded to (T*Bp, Ip) bf16."""
    # TODO(synk): for big vocabularies replace this XLA gather with a scalar-prefetch
    # Pallas DMA gather (PrefetchScalarGridSpec + pl.Element row blocks).
    B, T = tokens.shape
    tok_tm = jnp.pad(jnp.transpose(tokens), ((0, 0), (0, kp["Bp"] - B)))   # (T, Bp)
    return jnp.take(kp["embedding"], tok_tm.reshape(-1), axis=0)           # (T*Bp, Ip)


def next_word_gru_forward(tokens, kp):
    """tokens: (B, T) int32.  Returns logits (B, vocab) f32."""
    B, _ = tokens.shape
    x = embed_tokens(tokens, kp)
    h_last = gru_stack(x, kp["wih"], kp["whh"], kp["bi"], kp["bhn"],
                       batch_p=kp["Bp"])                                   # (Bp, Hp) bf16
    # Dropout: identity in eval mode.
    # TODO(synk): on v7x, prefetch the first FC weight tiles during the last GRU layer
    # (cross-pallas_call DMA future) so the FC weight stream is fully hidden.
    logits_p = fc_layer(h_last, kp["fc_w"], kp["fc_b"], kp["fc_tile"])     # (Bp, Vp) f32
    # repetition_penalty == 1.0 -> penalty branch is a no-op (not translated).
    return logits_p[:B, :kp["V"]]


# ------------------------- references (pure JAX) ---------------------------------
def forward_matched_ref(tokens, kp):
    """Mirrors the kernel's padded/bf16 arithmetic exactly (tight check)."""
    B, T = tokens.shape
    Bp, Hp, V = kp["Bp"], kp["Hp"], kp["V"]
    L = kp["wih"].shape[0]
    seq = embed_tokens(tokens, kp)                         # (T*Bp, Ip) bf16
    h = jnp.zeros((Bp, Hp), jnp.float32)
    for l in range(L):
        w = kp["wih"][l] if l == 0 else kp["wih"][l][:seq.shape[1], :]
        gi = jnp.dot(seq, w, preferred_element_type=jnp.float32) + kp["bi"][l]
        bhn = kp["bhn"][l]
        h = jnp.zeros((Bp, Hp), jnp.float32)
        rows = []
        for t in range(T):
            g = gi[t * Bp:(t + 1) * Bp]
            gh = jnp.dot(h.astype(jnp.bfloat16), kp["whh"][l],
                         preferred_element_type=jnp.float32)
            i_r, i_z, i_n = g[:, :Hp], g[:, Hp:2 * Hp], g[:, 2 * Hp:]
            h_r, h_z, h_n = gh[:, :Hp], gh[:, Hp:2 * Hp], gh[:, 2 * Hp:]
            r = jax.nn.sigmoid(i_r + h_r)
            z = jax.nn.sigmoid(i_z + h_z)
            n = jnp.tanh(i_n + r * (h_n + bhn))
            h = n + z * (h - n)
            rows.append(h.astype(jnp.bfloat16))
        seq = jnp.concatenate(rows, axis=0)                # (T*Bp, Hp) bf16
    logits = jnp.dot(h.astype(jnp.bfloat16), kp["fc_w"],
                     preferred_element_type=jnp.float32) + kp["fc_b"]
    return logits[:B, :V]


def forward_f32_ref(tokens, params):
    """Standard full-f32 PyTorch-style GRU semantics (loose check vs bf16 kernel)."""
    emb = jnp.take(params["embedding"], tokens, axis=0)
    x_seq = jnp.transpose(emb, (1, 0, 2))
    H = params["gru_layers"][0]["whh_t"].shape[0]
    for layer in params["gru_layers"]:
        wih_t, whh_t, bih, bhh = (layer["wih_t"], layer["whh_t"],
                                  layer["bih"], layer["bhh"])

        def step(h, x_t, wih_t=wih_t, whh_t=whh_t, bih=bih, bhh=bhh):
            gi = x_t @ wih_t + bih
            gh = h @ whh_t + bhh
            i_r, i_z, i_n = gi[:, :H], gi[:, H:2 * H], gi[:, 2 * H:]
            h_r, h_z, h_n = gh[:, :H], gh[:, H:2 * H], gh[:, 2 * H:]
            r = jax.nn.sigmoid(i_r + h_r)
            z = jax.nn.sigmoid(i_z + h_z)
            n = jnp.tanh(i_n + r * h_n)
            h_new = (1.0 - z) * n + z * h
            return h_new, h_new

        h0 = jnp.zeros((x_seq.shape[1], H), jnp.float32)
        _, x_seq = jax.lax.scan(step, h0, x_seq)
    return x_seq[-1] @ params["fc_w_t"] + params["fc_b"]


# ----------------------------------- main ----------------------------------------
if __name__ == "__main__":
    vocab_size, embed_size, hidden_size, num_layers = 64, 16, 32, 2
    batch, seq_len = 2, 8

    key = jax.random.PRNGKey(0)
    k_params, k_tokens = jax.random.split(key)
    params = init_params(k_params, vocab_size, embed_size, hidden_size, num_layers)
    tokens = jax.random.randint(k_tokens, (batch, seq_len), 0, vocab_size, jnp.int32)
    kp = prepare_kernel_params(params, batch)

    logits = jax.block_until_ready(next_word_gru_forward(tokens, kp))
    assert logits.shape == (batch, vocab_size)

    ref_matched = jax.block_until_ready(forward_matched_ref(tokens, kp))
    assert jnp.allclose(logits, ref_matched, atol=2e-3, rtol=2e-3), \
        "mismatch vs matched-precision reference"

    ref_f32 = jax.block_until_ready(forward_f32_ref(tokens, params))
    assert jnp.allclose(logits, ref_f32, atol=5e-2, rtol=0.0), \
        "mismatch vs float32 reference"

    print("KERNEL_OK")
</pallas_src>

<mosaic_0001>
module attributes {stable_mosaic.version = 11 : i64} {
  func.func @gru_stack_kernel(%arg0: i32, %arg1: memref<128x128xbf16, #tpu.memory_space<vmem>>, %arg2: memref<1x128x384xbf16, #tpu.memory_space<vmem>>, %arg3: memref<1x128x384xbf16, #tpu.memory_space<vmem>>, %arg4: memref<1x1x384xf32, #tpu.memory_space<vmem>>, %arg5: memref<1x1x128xf32, #tpu.memory_space<vmem>>, %arg6: memref<16x128xbf16, #tpu.memory_space<vmem>>, %arg7: memref<128x128xbf16, #tpu.memory_space<vmem>>, %arg8: memref<128x384xf32, #tpu.memory_space<vmem>>) attributes {dimension_semantics = [#tpu.dimension_semantics<arbitrary>], iteration_bounds = array<i64: 2>, scalar_prefetch = 0 : i64, scratch_operands = 2 : i64, tpu.core_type = #tpu.core_type<tc>, window_params = [{pipeline_mode = #tpu.pipeline_mode<synchronous>, transform_indices = @transform_0, window_bounds = array<i64: 128, 128>}, {transform_indices = @transform_1, window_bounds = array<i64: 1, 128, 384>}, {transform_indices = @transform_2, window_bounds = array<i64: 1, 128, 384>}, {transform_indices = @transform_3, window_bounds = array<i64: 1, 1, 384>}, {transform_indices = @transform_4, window_bounds = array<i64: 1, 1, 128>}, {pipeline_mode = #tpu.pipeline_mode<synchronous>, transform_indices = @transform_5, window_bounds = array<i64: 16, 128>}]} {
    %c0_i32 = arith.constant 0 : i32
    %0 = arith.cmpi eq, %arg0, %c0_i32 : i32
    %1 = arith.extui %0 : i1 to i32
    %c0_i32_0 = arith.constant 0 : i32
    %2 = arith.cmpi ne, %1, %c0_i32_0 : i32
    scf.if %2 {
      %c0_67 = arith.constant 0 : index
      %c0_68 = arith.constant 0 : index
      %293 = vector.load %arg1[%c0_67, %c0_68] : memref<128x128xbf16, #tpu.memory_space<vmem>>, vector<128x128xbf16>
      %c0_69 = arith.constant 0 : index
      %c0_70 = arith.constant 0 : index
      %294 = vector.load %arg7[%c0_69, %c0_70] : memref<128x128xbf16, #tpu.memory_space<vmem>>, vector<128x128xbf16>
      tpu.vector_store %arg7[%c0_69, %c0_70], %293 {strides = array<i32>} : memref<128x128xbf16, #tpu.memory_space<vmem>>, vector<128x128xbf16>,
    } else {
    }
    %c0 = arith.constant 0 : index
    %c0_1 = arith.constant 0 : index
    %3 = vector.load %arg7[%c0, %c0_1] : memref<128x128xbf16, #tpu.memory_space<vmem>>, vector<128x128xbf16>
    %c0_2 = arith.constant 0 : index
    %c0_3 = arith.constant 0 : index
    %c0_4 = arith.constant 0 : index
    %4 = vector.load %arg2[%c0_2, %c0_3, %c0_4] : memref<1x128x384xbf16, #tpu.memory_space<vmem>>, vector<1x128x384xbf16>
    %5 = vector.shape_cast %4 : vector<1x128x384xbf16> to vector<128x384xbf16>
    %cst = arith.constant dense<0.000000e+00> : vector<128x384xf32>
    %6 = tpu.matmul %3, %5, %cst {dimension_numbers = #tpu.dot_dimension_numbers<[1], [0], [0], [1], [0, 0, 1, 1], [], []>} : vector<128x128xbf16>, vector<128x384xbf16>, vector<128x384xf32> -> vector<128x384xf32>
    %c0_5 = arith.constant 0 : index
    %c0_6 = arith.constant 0 : index
    %c0_7 = arith.constant 0 : index
    %7 = vector.load %arg4[%c0_5, %c0_6, %c0_7] : memref<1x1x384xf32, #tpu.memory_space<vmem>>, vector<1x1x384xf32>
    %8 = vector.shape_cast %7 : vector<1x1x384xf32> to vector<1x384xf32>
    %9 = vector.broadcast %8 : vector<1x384xf32> to vector<128x384xf32>
    %10 = arith.addf %6, %9 : vector<128x384xf32>
    %c0_8 = arith.constant 0 : index
    %c0_9 = arith.constant 0 : index
    %11 = vector.load %arg8[%c0_8, %c0_9] : memref<128x384xf32, #tpu.memory_space<vmem>>, vector<128x384xf32>
    tpu.vector_store %arg8[%c0_8, %c0_9], %10 {strides = array<i32>} : memref<128x384xf32, #tpu.memory_space<vmem>>, vector<128x384xf32>,
    %c0_10 = arith.constant 0 : index
    %c0_11 = arith.constant 0 : index
    %c0_12 = arith.constant 0 : index
    %12 = vector.load %arg3[%c0_10, %c0_11, %c0_12] : memref<1x128x384xbf16, #tpu.memory_space<vmem>>, vector<1x128x384xbf16>
    %13 = vector.shape_cast %12 : vector<1x128x384xbf16> to vector<128x384xbf16>
    %c0_13 = arith.constant 0 : index
    %c0_14 = arith.constant 0 : index
    %c0_15 = arith.constant 0 : index
    %14 = vector.load %arg5[%c0_13, %c0_14, %c0_15] : memref<1x1x128xf32, #tpu.memory_space<vmem>>, vector<1x1x128xf32>
    %15 = vector.shape_cast %14 : vector<1x1x128xf32> to vector<1x128xf32>
    %16 = vector.shape_cast %15 : vector<1x128xf32> to vector<1x128xf32>
    %17 = vector.broadcast %16 : vector<1x128xf32> to vector<16x128xf32>
    %cst_16 = arith.constant 0.000000e+00 : f32
    %18 = vector.broadcast %cst_16 : f32 to vector<16x128xf32>
    %c0_i32_17 = arith.constant 0 : i32
    %c16_i32 = arith.constant 16 : i32
    %19 = arith.muli %c0_i32_17, %c16_i32 : i32
    %20 = tpu.assume_multiple %19, 16 : i32
    %21 = arith.index_cast %20 : i32 to index
    %c0_18 = arith.constant 0 : index
    %22 = vector.load %arg8[%21, %c0_18] : memref<128x384xf32, #tpu.memory_space<vmem>>, vector<16x384xf32>
    %23 = arith.truncf %18 : vector<16x128xf32> to vector<16x128xbf16>
    %cst_19 = arith.constant dense<0.000000e+00> : vector<16x384xf32>
    %24 = tpu.matmul %23, %13, %cst_19 {dimension_numbers = #tpu.dot_dimension_numbers<[1], [0], [0], [1], [0, 0, 1, 1], [], []>} : vector<16x128xbf16>, vector<128x384xbf16>, vector<16x384xf32> -> vector<16x384xf32>
    %25 = vector.extract_strided_slice %22 {offsets = [0, 0], sizes = [16, 128], strides = [1, 1]} : vector<16x384xf32> to vector<16x128xf32>
    %26 = vector.extract_strided_slice %22 {offsets = [0, 128], sizes = [16, 128], strides = [1, 1]} : vector<16x384xf32> to vector<16x128xf32>
    %27 = vector.extract_strided_slice %22 {offsets = [0, 256], sizes = [16, 128], strides = [1, 1]} : vector<16x384xf32> to vector<16x128xf32>
    %28 = vector.extract_strided_slice %24 {offsets = [0, 0], sizes = [16, 128], strides = [1, 1]} : vector<16x384xf32> to vector<16x128xf32>
    %29 = vector.extract_strided_slice %24 {offsets = [0, 128], sizes = [16, 128], strides = [1, 1]} : vector<16x384xf32> to vector<16x128xf32>
    %30 = vector.extract_strided_slice %24 {offsets = [0, 256], sizes = [16, 128], strides = [1, 1]} : vector<16x384xf32> to vector<16x128xf32>
    %31 = arith.addf %25, %28 : vector<16x128xf32>
    %32 = arith.negf %31 : vector<16x128xf32>
    %33 = math.exp %32 : vector<16x128xf32>
    %cst_20 = arith.constant 1.000000e+00 : f32
    %34 = vector.broadcast %cst_20 : f32 to vector<16x128xf32>
    %35 = arith.addf %34, %33 : vector<16x128xf32>
    %36 = arith.divf %34, %35 : vector<16x128xf32>
    %37 = arith.addf %26, %29 : vector<16x128xf32>
    %38 = arith.negf %37 : vector<16x128xf32>
    %39 = math.exp %38 : vector<16x128xf32>
    %cst_21 = arith.constant 1.000000e+00 : f32
    %40 = vector.broadcast %cst_21 : f32 to vector<16x128xf32>
    %41 = arith.addf %40, %39 : vector<16x128xf32>
    %42 = arith.divf %40, %41 : vector<16x128xf32>
    %43 = arith.addf %30, %17 : vector<16x128xf32>
    %44 = arith.mulf %36, %43 : vector<16x128xf32>
    %45 = arith.addf %27, %44 : vector<16x128xf32>
    %46 = math.tanh %45 : vector<16x128xf32>
    %47 = arith.subf %18, %46 : vector<16x128xf32>
    %48 = arith.mulf %42, %47 : vector<16x128xf32>
    %49 = arith.addf %46, %48 : vector<16x128xf32>
    %50 = arith.truncf %49 : vector<16x128xf32> to vector<16x128xbf16>
    %51 = arith.index_cast %20 : i32 to index
    %c0_22 = arith.constant 0 : index
    %52 = vector.load %arg7[%51, %c0_22] : memref<128x128xbf16, #tpu.memory_space<vmem>>, vector<16x128xbf16>
    tpu.vector_store %arg7[%51, %c0_22], %50 {strides = array<i32>} : memref<128x128xbf16, #tpu.memory_space<vmem>>, vector<16x128xbf16>,
    %c1_i32 = arith.constant 1 : i32
    %c16_i32_23 = arith.constant 16 : i32
    %53 = arith.muli %c1_i32, %c16_i32_23 : i32
    %54 = tpu.assume_multiple %53, 16 : i32
    %55 = arith.index_cast %54 : i32 to index
    %c0_24 = arith.constant 0 : index
    %56 = vector.load %arg8[%55, %c0_24] : memref<128x384xf32, #tpu.memory_space<vmem>>, vector<16x384xf32>
    %57 = arith.truncf %49 : vector<16x128xf32> to vector<16x128xbf16>
    %cst_25 = arith.constant dense<0.000000e+00> : vector<16x384xf32>
    %58 = tpu.matmul %57, %13, %cst_25 {dimension_numbers = #tpu.dot_dimension_numbers<[1], [0], [0], [1], [0, 0, 1, 1], [], []>} : vector<16x128xbf16>, vector<128x384xbf16>, vector<16x384xf32> -> vector<16x384xf32>
    %59 = vector.extract_strided_slice %56 {offsets = [0, 0], sizes = [16, 128], strides = [1, 1]} : vector<16x384xf32> to vector<16x128xf32>
    %60 = vector.extract_strided_slice %56 {offsets = [0, 128], sizes = [16, 128], strides = [1, 1]} : vector<16x384xf32> to vector<16x128xf32>
    %61 = vector.extract_strided_slice %56 {offsets = [0, 256], sizes = [16, 128], strides = [1, 1]} : vector<16x384xf32> to vector<16x128xf32>
    %62 = vector.extract_strided_slice %58 {offsets = [0, 0], sizes = [16, 128], strides = [1, 1]} : vector<16x384xf32> to vector<16x128xf32>
    %63 = vector.extract_strided_slice %58 {offsets = [0, 128], sizes = [16, 128], strides = [1, 1]} : vector<16x384xf32> to vector<16x128xf32>
    %64 = vector.extract_strided_slice %58 {offsets = [0, 256], sizes = [16, 128], strides = [1, 1]} : vector<16x384xf32> to vector<16x128xf32>
    %65 = arith.addf %59, %62 : vector<16x128xf32>
    %66 = arith.negf %65 : vector<16x128xf32>
    %67 = math.exp %66 : vector<16x128xf32>
    %cst_26 = arith.constant 1.000000e+00 : f32
    %68 = vector.broadcast %cst_26 : f32 to vector<16x128xf32>
    %69 = arith.addf %68, %67 : vector<16x128xf32>
    %70 = arith.divf %68, %69 : vector<16x128xf32>
    %71 = arith.addf %60, %63 : vector<16x128xf32>
    %72 = arith.negf %71 : vector<16x128xf32>
    %73 = math.exp %72 : vector<16x128xf32>
    %cst_27 = arith.constant 1.000000e+00 : f32
    %74 = vector.broadcast %cst_27 : f32 to vector<16x128xf32>
    %75 = arith.addf %74, %73 : vector<16x128xf32>
    %76 = arith.divf %74, %75 : vector<16x128xf32>
    %77 = arith.addf %64, %17 : vector<16x128xf32>
    %78 = arith.mulf %70, %77 : vector<16x128xf32>
    %79 = arith.addf %61, %78 : vector<16x128xf32>
    %80 = math.tanh %79 : vector<16x128xf32>
    %81 = arith.subf %49, %80 : vector<16x128xf32>
    %82 = arith.mulf %76, %81 : vector<16x128xf32>
    %83 = arith.addf %80, %82 : vector<16x128xf32>
    %84 = arith.truncf %83 : vector<16x128xf32> to vector<16x128xbf16>
    %85 = arith.index_cast %54 : i32 to index
    %c0_28 = arith.constant 0 : index
    %86 = vector.load %arg7[%85, %c0_28] : memref<128x128xbf16, #tpu.memory_space<vmem>>, vector<16x128xbf16>
    tpu.vector_store %arg7[%85, %c0_28], %84 {strides = array<i32>} : memref<128x128xbf16, #tpu.memory_space<vmem>>, vector<16x128xbf16>,
    %c2_i32 = arith.constant 2 : i32
    %c16_i32_29 = arith.constant 16 : i32
    %87 = arith.muli %c2_i32, %c16_i32_29 : i32
    %88 = tpu.assume_multiple %87, 16 : i32
    %89 = arith.index_cast %88 : i32 to index
    %c0_30 = arith.constant 0 : index
    %90 = vector.load %arg8[%89, %c0_30] : memref<128x384xf32, #tpu.memory_space<vmem>>, vector<16x384xf32>
    %91 = arith.truncf %83 : vector<16x128xf32> to vector<16x128xbf16>
    %cst_31 = arith.constant dense<0.000000e+00> : vector<16x384xf32>
    %92 = tpu.matmul %91, %13, %cst_31 {dimension_numbers = #tpu.dot_dimension_numbers<[1], [0], [0], [1], [0, 0, 1, 1], [], []>} : vector<16x128xbf16>, vector<128x384xbf16>, vector<16x384xf32> -> vector<16x384xf32>
    %93 = vector.extract_strided_slice %90 {offsets = [0, 0], sizes = [16, 128], strides = [1, 1]} : vector<16x384xf32> to vector<16x128xf32>
    %94 = vector.extract_strided_slice %90 {offsets = [0, 128], sizes = [16, 128], strides = [1, 1]} : vector<16x384xf32> to vector<16x128xf32>
    %95 = vector.extract_strided_slice %90 {offsets = [0, 256], sizes = [16, 128], strides = [1, 1]} : vector<16x384xf32> to vector<16x128xf32>
    %96 = vector.extract_strided_slice %92 {offsets = [0, 0], sizes = [16, 128], strides = [1, 1]} : vector<16x384xf32> to vector<16x128xf32>
    %97 = vector.extract_strided_slice %92 {offsets = [0, 128], sizes = [16, 128], strides = [1, 1]} : vector<16x384xf32> to vector<16x128xf32>
    %98 = vector.extract_strided_slice %92 {offsets = [0, 256], sizes = [16, 128], strides = [1, 1]} : vector<16x384xf32> to vector<16x128xf32>
    %99 = arith.addf %93, %96 : vector<16x128xf32>
    %100 = arith.negf %99 : vector<16x128xf32>
    %101 = math.exp %100 : vector<16x128xf32>
    %cst_32 = arith.constant 1.000000e+00 : f32
    %102 = vector.broadcast %cst_32 : f32 to vector<16x128xf32>
    %103 = arith.addf %102, %101 : vector<16x128xf32>
    %104 = arith.divf %102, %103 : vector<16x128xf32>
    %105 = arith.addf %94, %97 : vector<16x128xf32>
    %106 = arith.negf %105 : vector<16x128xf32>
    %107 = math.exp %106 : vector<16x128xf32>
    %cst_33 = arith.constant 1.000000e+00 : f32
    %108 = vector.broadcast %cst_33 : f32 to vector<16x128xf32>
    %109 = arith.addf %108, %107 : vector<16x128xf32>
    %110 = arith.divf %108, %109 : vector<16x128xf32>
    %111 = arith.addf %98, %17 : vector<16x128xf32>
    %112 = arith.mulf %104, %111 : vector<16x128xf32>
    %113 = arith.addf %95, %112 : vector<16x128xf32>
    %114 = math.tanh %113 : vector<16x128xf32>
    %115 = arith.subf %83, %114 : vector<16x128xf32>
    %116 = arith.mulf %110, %115 : vector<16x128xf32>
    %117 = arith.addf %114, %116 : vector<16x128xf32>
    %118 = arith.truncf %117 : vector<16x128xf32> to vector<16x128xbf16>
    %119 = arith.index_cast %88 : i32 to index
    %c0_34 = arith.constant 0 : index
    %120 = vector.load %arg7[%119, %c0_34] : memref<128x128xbf16, #tpu.memory_space<vmem>>, vector<16x128xbf16>
    tpu.vector_store %arg7[%119, %c0_34], %118 {strides = array<i32>} : memref<128x128xbf16, #tpu.memory_space<vmem>>, vector<16x128xbf16>,
    %c3_i32 = arith.constant 3 : i32
    %c16_i32_35 = arith.constant 16 : i32
    %121 = arith.muli %c3_i32, %c16_i32_35 : i32
    %122 = tpu.assume_multiple %121, 16 : i32
    %123 = arith.index_cast %122 : i32 to index
    %c0_36 = arith.constant 0 : index
    %124 = vector.load %arg8[%123, %c0_36] : memref<128x384xf32, #tpu.memory_space<vmem>>, vector<16x384xf32>
    %125 = arith.truncf %117 : vector<16x128xf32> to vector<16x128xbf16>
    %cst_37 = arith.constant dense<0.000000e+00> : vector<16x384xf32>
    %126 = tpu.matmul %125, %13, %cst_37 {dimension_numbers = #tpu.dot_dimension_numbers<[1], [0], [0], [1], [0, 0, 1, 1], [], []>} : vector<16x128xbf16>, vector<128x384xbf16>, vector<16x384xf32> -> vector<16x384xf32>
    %127 = vector.extract_strided_slice %124 {offsets = [0, 0], sizes = [16, 128], strides = [1, 1]} : vector<16x384xf32> to vector<16x128xf32>
    %128 = vector.extract_strided_slice %124 {offsets = [0, 128], sizes = [16, 128], strides = [1, 1]} : vector<16x384xf32> to vector<16x128xf32>
    %129 = vector.extract_strided_slice %124 {offsets = [0, 256], sizes = [16, 128], strides = [1, 1]} : vector<16x384xf32> to vector<16x128xf32>
    %130 = vector.extract_strided_slice %126 {offsets = [0, 0], sizes = [16, 128], strides = [1, 1]} : vector<16x384xf32> to vector<16x128xf32>
    %131 = vector.extract_strided_slice %126 {offsets = [0, 128], sizes = [16, 128], strides = [1, 1]} : vector<16x384xf32> to vector<16x128xf32>
    %132 = vector.extract_strided_slice %126 {offsets = [0, 256], sizes = [16, 128], strides = [1, 1]} : vector<16x384xf32> to vector<16x128xf32>
    %133 = arith.addf %127, %130 : vector<16x128xf32>
    %134 = arith.negf %133 : vector<16x128xf32>
    %135 = math.exp %134 : vector<16x128xf32>
    %cst_38 = arith.constant 1.000000e+00 : f32
    %136 = vector.broadcast %cst_38 : f32 to vector<16x128xf32>
    %137 = arith.addf %136, %135 : vector<16x128xf32>
    %138 = arith.divf %136, %137 : vector<16x128xf32>
    %139 = arith.addf %128, %131 : vector<16x128xf32>
    %140 = arith.negf %139 : vector<16x128xf32>
    %141 = math.exp %140 : vector<16x128xf32>
    %cst_39 = arith.constant 1.000000e+00 : f32
    %142 = vector.broadcast %cst_39 : f32 to vector<16x128xf32>
    %143 = arith.addf %142, %141 : vector<16x128xf32>
    %144 = arith.divf %142, %143 : vector<16x128xf32>
    %145 = arith.addf %132, %17 : vector<16x128xf32>
    %146 = arith.mulf %138, %145 : vector<16x128xf32>
    %147 = arith.addf %129, %146 : vector<16x128xf32>
    %148 = math.tanh %147 : vector<16x128xf32>
    %149 = arith.subf %117, %148 : vector<16x128xf32>
    %150 = arith.mulf %144, %149 : vector<16x128xf32>
    %151 = arith.addf %148, %150 : vector<16x128xf32>
    %152 = arith.truncf %151 : vector<16x128xf32> to vector<16x128xbf16>
    %153 = arith.index_cast %122 : i32 to index
    %c0_40 = arith.constant 0 : index
    %154 = vector.load %arg7[%153, %c0_40] : memref<128x128xbf16, #tpu.memory_space<vmem>>, vector<16x128xbf16>
    tpu.vector_store %arg7[%153, %c0_40], %152 {strides = array<i32>} : memref<128x128xbf16, #tpu.memory_space<vmem>>, vector<16x128xbf16>,
    %c4_i32 = arith.constant 4 : i32
    %c16_i32_41 = arith.constant 16 : i32
    %155 = arith.muli %c4_i32, %c16_i32_41 : i32
    %156 = tpu.assume_multiple %155, 16 : i32
    %157 = arith.index_cast %156 : i32 to index
    %c0_42 = arith.constant 0 : index
    %158 = vector.load %arg8[%157, %c0_42] : memref<128x384xf32, #tpu.memory_space<vmem>>, vector<16x384xf32>
    %159 = arith.truncf %151 : vector<16x128xf32> to vector<16x128xbf16>
    %cst_43 = arith.constant dense<0.000000e+00> : vector<16x384xf32>
    %160 = tpu.matmul %159, %13, %cst_43 {dimension_numbers = #tpu.dot_dimension_numbers<[1], [0], [0], [1], [0, 0, 1, 1], [], []>} : vector<16x128xbf16>, vector<128x384xbf16>, vector<16x384xf32> -> vector<16x384xf32>
    %161 = vector.extract_strided_slice %158 {offsets = [0, 0], sizes = [16, 128], strides = [1, 1]} : vector<16x384xf32> to vector<16x128xf32>
    %162 = vector.extract_strided_slice %158 {offsets = [0, 128], sizes = [16, 128], strides = [1, 1]} : vector<16x384xf32> to vector<16x128xf32>
    %163 = vector.extract_strided_slice %158 {offsets = [0, 256], sizes = [16, 128], strides = [1, 1]} : vector<16x384xf32> to vector<16x128xf32>
    %164 = vector.extract_strided_slice %160 {offsets = [0, 0], sizes = [16, 128], strides = [1, 1]} : vector<16x384xf32> to vector<16x128xf32>
    %165 = vector.extract_strided_slice %160 {offsets = [0, 128], sizes = [16, 128], strides = [1, 1]} : vector<16x384xf32> to vector<16x128xf32>
    %166 = vector.extract_strided_slice %160 {offsets = [0, 256], sizes = [16, 128], strides = [1, 1]} : vector<16x384xf32> to vector<16x128xf32>
    %167 = arith.addf %161, %164 : vector<16x128xf32>
    %168 = arith.negf %167 : vector<16x128xf32>
    %169 = math.exp %168 : vector<16x128xf32>
    %cst_44 = arith.constant 1.000000e+00 : f32
    %170 = vector.broadcast %cst_44 : f32 to vector<16x128xf32>
    %171 = arith.addf %170, %169 : vector<16x128xf32>
    %172 = arith.divf %170, %171 : vector<16x128xf32>
    %173 = arith.addf %162, %165 : vector<16x128xf32>
    %174 = arith.negf %173 : vector<16x128xf32>
    %175 = math.exp %174 : vector<16x128xf32>
    %cst_45 = arith.constant 1.000000e+00 : f32
    %176 = vector.broadcast %cst_45 : f32 to vector<16x128xf32>
    %177 = arith.addf %176, %175 : vector<16x128xf32>
    %178 = arith.divf %176, %177 : vector<16x128xf32>
    %179 = arith.addf %166, %17 : vector<16x128xf32>
    %180 = arith.mulf %172, %179 : vector<16x128xf32>
    %181 = arith.addf %163, %180 : vector<16x128xf32>
    %182 = math.tanh %181 : vector<16x128xf32>
    %183 = arith.subf %151, %182 : vector<16x128xf32>
    %184 = arith.mulf %178, %183 : vector<16x128xf32>
    %185 = arith.addf %182, %184 : vector<16x128xf32>
    %186 = arith.truncf %185 : vector<16x128xf32> to vector<16x128xbf16>
    %187 = arith.index_cast %156 : i32 to index
    %c0_46 = arith.constant 0 : index
    %188 = vector.load %arg7[%187, %c0_46] : memref<128x128xbf16, #tpu.memory_space<vmem>>, vector<16x128xbf16>
    tpu.vector_store %arg7[%187, %c0_46], %186 {strides = array<i32>} : memref<128x128xbf16, #tpu.memory_space<vmem>>, vector<16x128xbf16>,
    %c5_i32 = arith.constant 5 : i32
    %c16_i32_47 = arith.constant 16 : i32
    %189 = arith.muli %c5_i32, %c16_i32_47 : i32
    %190 = tpu.assume_multiple %189, 16 : i32
    %191 = arith.index_cast %190 : i32 to index
    %c0_48 = arith.constant 0 : index
    %192 = vector.load %arg8[%191, %c0_48] : memref<128x384xf32, #tpu.memory_space<vmem>>, vector<16x384xf32>
    %193 = arith.truncf %185 : vector<16x128xf32> to vector<16x128xbf16>
    %cst_49 = arith.constant dense<0.000000e+00> : vector<16x384xf32>
    %194 = tpu.matmul %193, %13, %cst_49 {dimension_numbers = #tpu.dot_dimension_numbers<[1], [0], [0], [1], [0, 0, 1, 1], [], []>} : vector<16x128xbf16>, vector<128x384xbf16>, vector<16x384xf32> -> vector<16x384xf32>
    %195 = vector.extract_strided_slice %192 {offsets = [0, 0], sizes = [16, 128], strides = [1, 1]} : vector<16x384xf32> to vector<16x128xf32>
    %196 = vector.extract_strided_slice %192 {offsets = [0, 128], sizes = [16, 128], strides = [1, 1]} : vector<16x384xf32> to vector<16x128xf32>
    %197 = vector.extract_strided_slice %192 {offsets = [0, 256], sizes = [16, 128], strides = [1, 1]} : vector<16x384xf32> to vector<16x128xf32>
    %198 = vector.extract_strided_slice %194 {offsets = [0, 0], sizes = [16, 128], strides = [1, 1]} : vector<16x384xf32> to vector<16x128xf32>
    %199 = vector.extract_strided_slice %194 {offsets = [0, 128], sizes = [16, 128], strides = [1, 1]} : vector<16x384xf32> to vector<16x128xf32>
    %200 = vector.extract_strided_slice %194 {offsets = [0, 256], sizes = [16, 128], strides = [1, 1]} : vector<16x384xf32> to vector<16x128xf32>
    %201 = arith.addf %195, %198 : vector<16x128xf32>
    %202 = arith.negf %201 : vector<16x128xf32>
    %203 = math.exp %202 : vector<16x128xf32>
    %cst_50 = arith.constant 1.000000e+00 : f32
    %204 = vector.broadcast %cst_50 : f32 to vector<16x128xf32>
    %205 = arith.addf %204, %203 : vector<16x128xf32>
    %206 = arith.divf %204, %205 : vector<16x128xf32>
    %207 = arith.addf %196, %199 : vector<16x128xf32>
    %208 = arith.negf %207 : vector<16x128xf32>
    %209 = math.exp %208 : vector<16x128xf32>
    %cst_51 = arith.constant 1.000000e+00 : f32
    %210 = vector.broadcast %cst_51 : f32 to vector<16x128xf32>
    %211 = arith.addf %210, %209 : vector<16x128xf32>
    %212 = arith.divf %210, %211 : vector<16x128xf32>
    %213 = arith.addf %200, %17 : vector<16x128xf32>
    %214 = arith.mulf %206, %213 : vector<16x128xf32>
    %215 = arith.addf %197, %214 : vector<16x128xf32>
    %216 = math.tanh %215 : vector<16x128xf32>
    %217 = arith.subf %185, %216 : vector<16x128xf32>
    %218 = arith.mulf %212, %217 : vector<16x128xf32>
    %219 = arith.addf %216, %218 : vector<16x128xf32>
    %220 = arith.truncf %219 : vector<16x128xf32> to vector<16x128xbf16>
    %221 = arith.index_cast %190 : i32 to index
    %c0_52 = arith.constant 0 : index
    %222 = vector.load %arg7[%221, %c0_52] : memref<128x128xbf16, #tpu.memory_space<vmem>>, vector<16x128xbf16>
    tpu.vector_store %arg7[%221, %c0_52], %220 {strides = array<i32>} : memref<128x128xbf16, #tpu.memory_space<vmem>>, vector<16x128xbf16>,
    %c6_i32 = arith.constant 6 : i32
    %c16_i32_53 = arith.constant 16 : i32
    %223 = arith.muli %c6_i32, %c16_i32_53 : i32
    %224 = tpu.assume_multiple %223, 16 : i32
    %225 = arith.index_cast %224 : i32 to index
    %c0_54 = arith.constant 0 : index
    %226 = vector.load %arg8[%225, %c0_54] : memref<128x384xf32, #tpu.memory_space<vmem>>, vector<16x384xf32>
    %227 = arith.truncf %219 : vector<16x128xf32> to vector<16x128xbf16>
    %cst_55 = arith.constant dense<0.000000e+00> : vector<16x384xf32>
    %228 = tpu.matmul %227, %13, %cst_55 {dimension_numbers = #tpu.dot_dimension_numbers<[1], [0], [0], [1], [0, 0, 1, 1], [], []>} : vector<16x128xbf16>, vector<128x384xbf16>, vector<16x384xf32> -> vector<16x384xf32>
    %229 = vector.extract_strided_slice %226 {offsets = [0, 0], sizes = [16, 128], strides = [1, 1]} : vector<16x384xf32> to vector<16x128xf32>
    %230 = vector.extract_strided_slice %226 {offsets = [0, 128], sizes = [16, 128], strides = [1, 1]} : vector<16x384xf32> to vector<16x128xf32>
    %231 = vector.extract_strided_slice %226 {offsets = [0, 256], sizes = [16, 128], strides = [1, 1]} : vector<16x384xf32> to vector<16x128xf32>
    %232 = vector.extract_strided_slice %228 {offsets = [0, 0], sizes = [16, 128], strides = [1, 1]} : vector<16x384xf32> to vector<16x128xf32>
    %233 = vector.extract_strided_slice %228 {offsets = [0, 128], sizes = [16, 128], strides = [1, 1]} : vector<16x384xf32> to vector<16x128xf32>
    %234 = vector.extract_strided_slice %228 {offsets = [0, 256], sizes = [16, 128], strides = [1, 1]} : vector<16x384xf32> to vector<16x128xf32>
    %235 = arith.addf %229, %232 : vector<16x128xf32>
    %236 = arith.negf %235 : vector<16x128xf32>
    %237 = math.exp %236 : vector<16x128xf32>
    %cst_56 = arith.constant 1.000000e+00 : f32
    %238 = vector.broadcast %cst_56 : f32 to vector<16x128xf32>
    %239 = arith.addf %238, %237 : vector<16x128xf32>
    %240 = arith.divf %238, %239 : vector<16x128xf32>
    %241 = arith.addf %230, %233 : vector<16x128xf32>
    %242 = arith.negf %241 : vector<16x128xf32>
    %243 = math.exp %242 : vector<16x128xf32>
    %cst_57 = arith.constant 1.000000e+00 : f32
    %244 = vector.broadcast %cst_57 : f32 to vector<16x128xf32>
    %245 = arith.addf %244, %243 : vector<16x128xf32>
    %246 = arith.divf %244, %245 : vector<16x128xf32>
    %247 = arith.addf %234, %17 : vector<16x128xf32>
    %248 = arith.mulf %240, %247 : vector<16x128xf32>
    %249 = arith.addf %231, %248 : vector<16x128xf32>
    %250 = math.tanh %249 : vector<16x128xf32>
    %251 = arith.subf %219, %250 : vector<16x128xf32>
    %252 = arith.mulf %246, %251 : vector<16x128xf32>
    %253 = arith.addf %250, %252 : vector<16x128xf32>
    %254 = arith.truncf %253 : vector<16x128xf32> to vector<16x128xbf16>
    %255 = arith.index_cast %224 : i32 to index
    %c0_58 = arith.constant 0 : index
    %256 = vector.load %arg7[%255, %c0_58] : memref<128x128xbf16, #tpu.memory_space<vmem>>, vector<16x128xbf16>
    tpu.vector_store %arg7[%255, %c0_58], %254 {strides = array<i32>} : memref<128x128xbf16, #tpu.memory_space<vmem>>, vector<16x128xbf16>,
    %c7_i32 = arith.constant 7 : i32
    %c16_i32_59 = arith.constant 16 : i32
    %257 = arith.muli %c7_i32, %c16_i32_59 : i32
    %258 = tpu.assume_multiple %257, 16 : i32
    %259 = arith.index_cast %258 : i32 to index
    %c0_60 = arith.constant 0 : index
    %260 = vector.load %arg8[%259, %c0_60] : memref<128x384xf32, #tpu.memory_space<vmem>>, vector<16x384xf32>
    %261 = arith.truncf %253 : vector<16x128xf32> to vector<16x128xbf16>
    %cst_61 = arith.constant dense<0.000000e+00> : vector<16x384xf32>
    %262 = tpu.matmul %261, %13, %cst_61 {dimension_numbers = #tpu.dot_dimension_numbers<[1], [0], [0], [1], [0, 0, 1, 1], [], []>} : vector<16x128xbf16>, vector<128x384xbf16>, vector<16x384xf32> -> vector<16x384xf32>
    %263 = vector.extract_strided_slice %260 {offsets = [0, 0], sizes = [16, 128], strides = [1, 1]} : vector<16x384xf32> to vector<16x128xf32>
    %264 = vector.extract_strided_slice %260 {offsets = [0, 128], sizes = [16, 128], strides = [1, 1]} : vector<16x384xf32> to vector<16x128xf32>
    %265 = vector.extract_strided_slice %260 {offsets = [0, 256], sizes = [16, 128], strides = [1, 1]} : vector<16x384xf32> to vector<16x128xf32>
    %266 = vector.extract_strided_slice %262 {offsets = [0, 0], sizes = [16, 128], strides = [1, 1]} : vector<16x384xf32> to vector<16x128xf32>
    %267 = vector.extract_strided_slice %262 {offsets = [0, 128], sizes = [16, 128], strides = [1, 1]} : vector<16x384xf32> to vector<16x128xf32>
    %268 = vector.extract_strided_slice %262 {offsets = [0, 256], sizes = [16, 128], strides = [1, 1]} : vector<16x384xf32> to vector<16x128xf32>
    %269 = arith.addf %263, %266 : vector<16x128xf32>
    %270 = arith.negf %269 : vector<16x128xf32>
    %271 = math.exp %270 : vector<16x128xf32>
    %cst_62 = arith.constant 1.000000e+00 : f32
    %272 = vector.broadcast %cst_62 : f32 to vector<16x128xf32>
    %273 = arith.addf %272, %271 : vector<16x128xf32>
    %274 = arith.divf %272, %273 : vector<16x128xf32>
    %275 = arith.addf %264, %267 : vector<16x128xf32>
    %276 = arith.negf %275 : vector<16x128xf32>
    %277 = math.exp %276 : vector<16x128xf32>
    %cst_63 = arith.constant 1.000000e+00 : f32
    %278 = vector.broadcast %cst_63 : f32 to vector<16x128xf32>
    %279 = arith.addf %278, %277 : vector<16x128xf32>
    %280 = arith.divf %278, %279 : vector<16x128xf32>
    %281 = arith.addf %268, %17 : vector<16x128xf32>
    %282 = arith.mulf %274, %281 : vector<16x128xf32>
    %283 = arith.addf %265, %282 : vector<16x128xf32>
    %284 = math.tanh %283 : vector<16x128xf32>
    %285 = arith.subf %253, %284 : vector<16x128xf32>
    %286 = arith.mulf %280, %285 : vector<16x128xf32>
    %287 = arith.addf %284, %286 : vector<16x128xf32>
    %288 = arith.truncf %287 : vector<16x128xf32> to vector<16x128xbf16>
    %289 = arith.index_cast %258 : i32 to index
    %c0_64 = arith.constant 0 : index
    %290 = vector.load %arg7[%289, %c0_64] : memref<128x128xbf16, #tpu.memory_space<vmem>>, vector<16x128xbf16>
    tpu.vector_store %arg7[%289, %c0_64], %288 {strides = array<i32>} : memref<128x128xbf16, #tpu.memory_space<vmem>>, vector<16x128xbf16>,
    %c8_i32 = arith.constant 8 : i32
    %291 = arith.truncf %287 : vector<16x128xf32> to vector<16x128xbf16>
    %c0_65 = arith.constant 0 : index
    %c0_66 = arith.constant 0 : index
    %292 = vector.load %arg6[%c0_65, %c0_66] : memref<16x128xbf16, #tpu.memory_space<vmem>>, vector<16x128xbf16>
    tpu.vector_store %arg6[%c0_65, %c0_66], %291 {strides = array<i32>} : memref<16x128xbf16, #tpu.memory_space<vmem>>, vector<16x128xbf16>,
    return
  }
  func.func @transform_0(%arg0: i32) -> (i32, i32) {
    %c0_i32 = arith.constant 0 : i32
    %c0_i32_0 = arith.constant 0 : i32
    %c0_i32_1 = arith.constant 0 : i32
    return %c0_i32, %c0_i32_0 : i32, i32
  }
  func.func @transform_1(%arg0: i32) -> (i32, i32, i32) {
    %c0_i32 = arith.constant 0 : i32
    %c0_i32_0 = arith.constant 0 : i32
    %c0_i32_1 = arith.constant 0 : i32
    return %arg0, %c0_i32, %c0_i32_0 : i32, i32, i32
  }
  func.func @transform_2(%arg0: i32) -> (i32, i32, i32) {
    %c0_i32 = arith.constant 0 : i32
    %c0_i32_0 = arith.constant 0 : i32
    %c0_i32_1 = arith.constant 0 : i32
    return %arg0, %c0_i32, %c0_i32_0 : i32, i32, i32
  }
  func.func @transform_3(%arg0: i32) -> (i32, i32, i32) {
    %c0_i32 = arith.constant 0 : i32
    %c0_i32_0 = arith.constant 0 : i32
    %c0_i32_1 = arith.constant 0 : i32
    return %arg0, %c0_i32, %c0_i32_0 : i32, i32, i32
  }
  func.func @transform_4(%arg0: i32) -> (i32, i32, i32) {
    %c0_i32 = arith.constant 0 : i32
    %c0_i32_0 = arith.constant 0 : i32
    %c0_i32_1 = arith.constant 0 : i32
    return %arg0, %c0_i32, %c0_i32_0 : i32, i32, i32
  }
  func.func @transform_5(%arg0: i32) -> (i32, i32) {
    %c0_i32 = arith.constant 0 : i32
    %c0_i32_0 = arith.constant 0 : i32
    %c0_i32_1 = arith.constant 0 : i32
    return %c0_i32, %c0_i32_0 : i32, i32
  }
}

</mosaic_0001>

<bundles_post_ra>
// kernel: tpu_custom_call.1
= control target key start
LH: loop header
LB: loop body
LE: loop exit
PB: predicated region body
PF: predicated region fallthrough
CT: control target
= control target key end

     0   :  { %10 = vsyncpa [#allocation5], 0  ;;  %s4083_s0 = inlined_call_operand.hbm [shape: bf16[128,128], index: 0, kind: input, shape index: {}]   ;;  %s4084_s1 = inlined_call_operand.hbm [shape: bf16[2,128,384], index: 1, kind: input, shape index: {}]   ;;  %s4085_s2 = inlined_call_operand.hbm [shape: bf16[2,128,384], index: 2, kind: input, shape index: {}]   ;;  %s4086_s3 = inlined_call_operand.vmem [shape: f32[2,1,384], index: 3, kind: input, shape index: {}]   ;;  %s4087_s4 = inlined_call_operand.vmem [shape: f32[2,1,128], index: 4, kind: input, shape index: {}]   ;;  %s4088_s5 = inlined_call_operand.hbm [shape: bf16[16,128], index: 5, kind: output, shape index: {}]  }
   0x1   :  { %11 = vsyncpa [#allocation8], 0 }
   0x2   :  { %13 = vsyncpa [#allocation8 + $0x1], 0 }
   0x3   :  { %14 = vsyncpa [#allocation6], 0  ;;  %s3222_s18 = smov 0   ;;  %s3224_s19 = smov 0  }
   0x4   :  { %s3226_s20 = smov 0   ;;  %s3228_s21 = smov 0  }
   0x5 LB: > { %s3243_s22 = sadd.s32 1, %s3177_s21   ;;  %s48_s23 = sadd.s32 1, %s3173_s20  ;;  %s3177_s21 = sphi %s3228_s21, %s4118_s21   ;;  %s3173_s20 = sphi %s3226_s20, %s4117_s20   ;;  %s3169_s19 = sphi %s3224_s19, %s4116_s19   ;;  %s3165_s18 = sphi %s3222_s18, %s4115_s18  }
   0x6   : > { %s45_s24 = ssub.s32 %s3177_s21, %s3243_s22  ;;  %p55_p0 = scmp.ne.s32.totalorder %s3173_s20, %s3169_s19 }
   0x7   : > { %p46_p1 = scmp.eq.s32.totalorder %s45_s24, 0  ;;  %p56_p2 = scmp.eq.s32.totalorder %s3177_s21, 0 }
   0x8   : > { %p2717_p3 = scmp.lt.s32.totalorder %s3177_s21, 2  ;;  %s197_s26 = sand.u32 1, %s3177_s21  }
   0x9   : > { %s3253_s25 = scalar_select %p46_p1, %s3173_s20, %s48_s23  }
   0xa   : > { %p57_p4 = por %p56_p2, %p55_p0  ;;  %s199_s27 = sand.u32 1, %s3173_s20  }
   0xb   : > { %s3257_s28 = smul.u32 192, %s199_s27  ;;  %s3274_s11 = scalar_lea.sflag [#allocation8], %s197_s26 }
   0xc   : > { %p3259_p5 = pnand %p2717_p3, %p57_p4  ;;  %s2688_s30 = smul.u32 3072, %s3177_s21 }
   0xd   : > { %s201_s9 = scalar_lea.vmem [#allocation7], %s3257_s28  ;;  %s3026_s15 = scalar_lea.hbm %s4084_s1, 6144 }
   0xe   : > { %s4100_s29 = scalar_select %p3259_p5, 1, 0 }
   0xf   : > { %s3269_s8 = scalar_lea.hbm %s4084_s1, %s2688_s30  ;;  %s208_s10 = sshll.u32 %s201_s9, 4  ;;  %s3272_s10 = int_to_ptr.vmem [resolvable:$true] %s208_s10 }
  0x10   : > { %s3021_s12 = scalar_lea.hbm %s3269_s8, 3072  ;;  %p4091_p7 = pneg %p3259_p5 }
  0x11   : > { %p3022_p6 = scmp.ne.s32.totalorder %s3269_s8, %s3021_s12  ;;  %p3027_p10 = scmp.lt.u32.totalorder %s3269_s8, %s4084_s1 }
  0x12   : > { %p3028_p11 = scmp.lt.u32.totalorder %s3026_s15, %s3021_s12  ;;  %p3030_p13 = scmp.lt.u32.totalorder %s3021_s12, %s3269_s8 }
  0x13   : > { %p3024_p8 = pnand %p4091_p7, %p3022_p6 }
  0x14   : > { %p3029_p12 = por %p3028_p11, %p3027_p10 }
  0x15   : > { %p3025_p9 = pneg %p3024_p8 }
  0x16   : > { %p3031_p0 = por %p3030_p13, %p3029_p12 }
  0x18   : > { %p3032_p1 = pnand %p3031_p0, %p3025_p9 }
  0x1a   : > { %3035 = shalt.err (!%p3032_p1)
}
  0x1b   : > { %s3036_s23 = scalar_lea.vmem %s3272_s10, 3072  ;;  %s3179_s24 = smov [#allocation7]  }
  0x1c   : > { %p3037_p2 = scmp.ne.s32.totalorder %s3272_s10, %s3036_s23  ;;  %s3041_s26 = sshll.u32 %s3179_s24, 4  ;;  %s3042_s26 = int_to_ptr.vmem [resolvable:$false] %s3041_s26 }
  0x1d   : > { %s3043_s27 = scalar_lea.vmem %s3042_s26, 6144  ;;  %p3044_p6 = scmp.lt.s32.totalorder %s3272_s10, %s3042_s26 }
  0x1e   : > { %p3039_p3 = pnand %p3037_p2, %p4091_p7  ;;  %p3045_p8 = scmp.lt.s32.totalorder %s3043_s27, %s3036_s23 }
  0x20   : > { %p3040_p4 = pneg %p3039_p3  ;;  %p3046_p10 = por %p3045_p8, %p3044_p6 }
  0x22   : > { %p3047_p11 = pnand %p3046_p10, %p3040_p4 }
  0x24   : > { %3050 = shalt.err (!%p3047_p11)
}
  0x25   : > { %s4089_s6 = smov 192   ;;  %s3181_s7 = smov 12  }
  0x26   : > { %2712 = dma.hbm_to_vmem [thread:$0]  (!%p3259_p5), %s3269_s8, 3072, %s3272_s10, %s3274_s11, %s4089_s6, %s4089_s6, %s3181_s7  }
  0x27   : > { %s3306_s9 = sadd.s32 4294967295, %s3177_s21   ;;  %p61_p12 = scmp.ne.s32.totalorder %s3169_s19, %s3165_s18 }
  0x28   : > { %p4090_p9 = scmp.eq.s32.totalorder %s3306_s9, 0  ;;  %p2233_p13 = scmp.ge.s32.totalorder %s3177_s21, 1 }
  0x29   : > { %p171_p0 = scmp.lt.s32.totalorder %s3177_s21, 3  ;;  %s3182_s8 = smov [#allocation4]  }
  0x2a   : > { %p3316_p2 = por %p4090_p9, %p61_p12  ;;  %s183_s10 = sshll.u32 %s3182_s8, 4  ;;  %s3324_s10 = int_to_ptr.vmem [resolvable:$true] %s183_s10 }
  0x2b   : > { %p3320_p3 = pnand %p2233_p13, %p171_p0  ;;  %s222_s14 = scalar_lea.vmem [#allocation9], %s3257_s28 }
  0x2c   : > { %s4101_s12 = scalar_select %p3316_p2, 1, 0 }
  0x2d   : > { %s4102_s13 = scalar_select %p3320_p3, 1, 0 }
  0x2e   : > { %p2705_p4 = pneg %p3320_p3  ;;  %s229_s15 = sshll.u32 %s222_s14, 4  ;;  %s3342_s15 = int_to_ptr.vmem [resolvable:$true] %s229_s15 }
  0x2f   : > { %s3340_s23 = scalar_lea.hbm %s4085_s2, %s2688_s30  ;;  %s3051_s27 = scalar_lea.hbm %s4083_s0, 1024 }
  0x30   : > { %p3330_p6 = pnand %p2705_p4, %p4090_p9  ;;  %p3052_p8 = scmp.ne.s32.totalorder %s4083_s0, %s3051_s27 }
  0x31   : > { %p3058_p13 = scmp.lt.u32.totalorder %s3051_s27, %s4083_s0 }
  0x32   : > { %p3053_p10 = pneg %p3330_p6 }
  0x34   : > { %p3054_p11 = pnand %p3053_p10, %p3052_p8 }
  0x36   : > { %p3055_p12 = pneg %p3054_p11 }
  0x38   : > { %p3060_p0 = pnand %p3058_p13, %p3055_p12 }
  0x3a   : > { %3063 = shalt.err (!%p3060_p0)
}
  0x3b   : > { %s3064_s30 = scalar_lea.vmem %s3324_s10, 1024  ;;  %p3072_p7 = scmp.lt.s32.totalorder %s3324_s10, %s3324_s10 }
  0x3c   : > { %p3065_p4 = scmp.ne.s32.totalorder %s3324_s10, %s3064_s30  ;;  %p3073_p2 = scmp.lt.s32.totalorder %s3064_s30, %s3064_s30 }
  0x3e   : > { %p3067_p1 = pnand %p3065_p4, %p3053_p10  ;;  %p3074_p3 = por %p3073_p2, %p3072_p7 }
  0x40   : > { %p3068_p9 = pneg %p3067_p1 }
  0x42   : > { %p3075_p5 = pnand %p3074_p3, %p3068_p9 }
  0x44   : > { %3078 = shalt.err (!%p3075_p5)
}
  0x45   : > { %s3183_s6 = smov 64   ;;  %s3184_s14 = smov 4  }
  0x46   : > { %2708 = dma.hbm_to_vmem [thread:$0]  (!%p3330_p6), %s4083_s0, 1024, %s3324_s10, [#allocation5], %s3183_s6, %s3183_s6, %s3184_s14  }
  0x47   : > { %s3079_s24 = scalar_lea.hbm %s3340_s23, 3072  ;;  %p4104_p8 = scmp.ne.s32.totalorder %s4100_s29, 0 }
  0x48   : > { %p3080_p1 = scmp.ne.s32.totalorder %s3340_s23, %s3079_s24  ;;  %s3084_s8 = scalar_lea.hbm %s4085_s2, 6144 }
  0x49   : > { %p4105_p7 = pneg %p4104_p8  ;;  %p3085_p2 = scmp.lt.u32.totalorder %s3340_s23, %s4085_s2 }
  0x4a   : > { %p3086_p3 = scmp.lt.u32.totalorder %s3084_s8, %s3079_s24  ;;  %p3088_p11 = scmp.lt.u32.totalorder %s3079_s24, %s3340_s23 }
  0x4b   : > { %p3082_p9 = pnand %p3080_p1, %p4105_p7 }
  0x4c   : > { %p3087_p10 = por %p3086_p3, %p3085_p2 }
  0x4d   : > { %p3083_p5 = pneg %p3082_p9 }
  0x4e   : > { %p3089_p12 = por %p3088_p11, %p3087_p10 }
  0x50   : > { %p3090_p13 = pnand %p3089_p12, %p3083_p5 }
  0x52   : > { %3093 = shalt.err (!%p3090_p13)
}
  0x53   : > { %s3094_s10 = scalar_lea.vmem %s3342_s15, 3072  ;;  %p4106_p0 = pmov %p4105_p7 }
  0x54   : > { %p3095_p6 = scmp.ne.s32.totalorder %s3342_s15, %s3094_s10  ;;  %s3185_s18 = smov [#allocation9]  }
  0x55   : > { %s3099_s30 = sshll.u32 %s3185_s18, 4  ;;  %s3100_s30 = int_to_ptr.vmem [resolvable:$false] %s3099_s30 }
  0x56   : > { %p3097_p4 = pnand %p3095_p6, %p4106_p0  ;;  %s3101_s6 = scalar_lea.vmem %s3100_s30, 6144 }
  0x57   : > { %p3102_p7 = scmp.lt.s32.totalorder %s3342_s15, %s3100_s30  ;;  %p3103_p9 = scmp.lt.s32.totalorder %s3101_s6, %s3094_s10 }
  0x58   : > { %p3098_p1 = pneg %p3097_p4 }
  0x59   : > { %p3104_p2 = por %p3103_p9, %p3102_p7 }
  0x5b   : > { %p3105_p3 = pnand %p3104_p2, %p3098_p1 }
  0x5d   : > { %3108 = shalt.err (!%p3105_p3)
}
  0x5e   : > { %s4107_s14 = smov 192   ;;  %p4108_p5 = scmp.ne.s32.totalorder %s4102_s13, 0 }
  0x5f   : > { %2715 = dma.hbm_to_vmem [thread:$0]  (!%p4104_p8), %s3340_s23, 3072, %s3342_s15, %s3274_s11, %s4107_s14, %s4107_s14, %s3181_s7  }
  0x60   : > { %254 = sbr.rel (%p4108_p5) target bundleno = 2352 (0x930), region = 40  ;;  %p4109_p10 = scmp.eq.s32.totalorder (!%p4108_p5), %s3306_s9, 0 }
  0x67   : > { %3152 = dma.done.wait (%p4109_p10), [#allocation5], 1024   ;;  %p4110_p11 = pmov %p4109_p10 }
  0x68   : > { %s260_s29 = sand.u32 1, %s3306_s9   ;;  %s262_s16 = sand.u32 1, %s3169_s19  }
  0x69   : > { %3154 = vsyncadd (%p4110_p11), [#allocation5], 4294966272  ;;  %s2691_s17 = smul.u32 192, %s262_s16  ;;  %s261_s24 = scalar_lea.sflag [#allocation8], %s260_s29 }
  0x6a   : > { %p4111_p12 = scmp.ne.s32.totalorder %s4101_s12, 0 }
  0x6b   : > { %s3400_s26 = scalar_lea.vmem [#allocation7], %s2691_s17 }
  0x6c   : > { %3156 = dma.done.wait (%p4111_p12), %s261_s24, 6144  }
  0x6d   : > { %3158 = vsyncadd (%p4111_p12), %s261_s24, 4294961152  ;;  %p307_p8 = scmp.lt.s32.totalorder %s3306_s9, 1  ;;  %s3418_s28 = scalar_lea.vmem [#allocation9], %s2691_s17 }
  0x6e   : > { %p4112_p13 = scmp.ne.s32.totalorder %s3306_s9, 0 }
  0x6f   : > { %s308_s11 = scalar_select %p307_p8, %s3306_s9, 1 }
  0x70   : > { %318 = sbr.rel (%p4112_p13) target bundleno = 119 (0x77), region = 56  ;;  %v2764_v0 = vld [vmem:[#allocation4] sm:$0xff] (!%p4112_p13)   ;;  %v2765_v1 = vld [vmem:[#allocation4 + $0x8] sm:$0xff] (!%p4112_p13)   ;;  %v2766_v2 = vld [vmem:[#allocation4 + $0x10] sm:$0xff] (!%p4112_p13)  }
  0x71   : > { %s2692_s7 = smul.u32 3, %s308_s11  ;;  %s3411_s23 = scalar_lea.vmem %s4087_s4, %s308_s11  ;;  %383 = vst [vmem:[#allocation2] sm:$0xff] (!%p4112_p13), %v2764_v0  ;;  %384 = vst [vmem:[#allocation2 + $0x8] sm:$0xff] (!%p4112_p13), %v2765_v1  ;;  %v2767_v3 = vld [vmem:[#allocation4 + $0x18] sm:$0xff] (!%p4112_p13)   ;;  %v2768_v4 = vld [vmem:[#allocation4 + $0x20] sm:$0xff] (!%p4112_p13)  }
  0x72   : > { %385 = vst [vmem:[#allocation2 + $0x10] sm:$0xff] (!%p4112_p13), %v2766_v2  ;;  %386 = vst [vmem:[#allocation2 + $0x18] sm:$0xff] (!%p4112_p13), %v2767_v3  ;;  %v2769_v5 = vld [vmem:[#allocation4 + $0x28] sm:$0xff] (!%p4112_p13)   ;;  %v2770_v6 = vld [vmem:[#allocation4 + $0x30] sm:$0xff] (!%p4112_p13)  }
  0x73   : > { %s3416_s21 = scalar_lea.vmem %s4086_s3, %s2692_s7  ;;  %387 = vst [vmem:[#allocation2 + $0x20] sm:$0xff] (!%p4112_p13), %v2768_v4  ;;  %388 = vst [vmem:[#allocation2 + $0x28] sm:$0xff] (!%p4112_p13), %v2769_v5  ;;  %v2771_v7 = vld [vmem:[#allocation4 + $0x38] sm:$0xff] (!%p4112_p13)  }
  0x74   : > { %389 = vst [vmem:[#allocation2 + $0x30] sm:$0xff] (!%p4112_p13), %v2770_v6  ;;  %390 = vst [vmem:[#allocation2 + $0x38] sm:$0xff] (!%p4112_p13), %v2771_v7 }
  0x77 PF: > { %v2772_v8 = vld [vmem:[%s3400_s26 + $0x4] ss:$12 sps:$4 sm:$0xff]   ;;  %v2774_v9 = vld [vmem:[%s3400_s26] ss:$12 sps:$4 sm:$0xff]   ;;  %v4096_v10 = vmov 0   ;;  %v4098_v47 = vmov 0.0   ;;  %v433_v2 = vlaneseq }
  0x78   : > { %608 = vmatprep.mubr.bf16.mxu0 %v4096_v10  ;;  %576 = vmatprep.subr.bf16.mxu0 %v2772_v8  ;;  %v2775_v11 = vld [vmem:[%s3400_s26 + $0x1c] ss:$12 sps:$4 sm:$0xff]   ;;  %v2777_v12 = vld [vmem:[%s3400_s26 + $0x18] ss:$12 sps:$4 sm:$0xff]   ;;  %v2778_v13 = vld [vmem:[%s3400_s26 + $0x34] ss:$12 sps:$4 sm:$0xff]  }
  0x79   : > { %577 = vmatpush1.bf16.msra.mxu0 %v2774_v9  ;;  %v2780_v14 = vld [vmem:[%s3400_s26 + $0x30] ss:$12 sps:$4 sm:$0xff]   ;;  %v2781_v15 = vld [vmem:[%s3400_s26 + $0x4c] ss:$12 sps:$4 sm:$0xff]   ;;  %v391_v16 = vld [vmem:[#allocation2] sm:$0xff]  ;;  %vm3188_vm0 = vmmov 0  }
  0x7a   : > { %578 = vmatprep.subr.bf16.mxu0 %v2775_v11  ;;  %v2783_v17 = vld [vmem:[%s3400_s26 + $0x48] ss:$12 sps:$4 sm:$0xff]   ;;  %2447 = vmatprep.mubr.bf16.mxu1 %v391_v16  ;;  %v2784_v18 = vld [vmem:[%s3400_s26 + $0x64] ss:$12 sps:$4 sm:$0xff]   ;;  %v2786_v19 = vld [vmem:[%s3400_s26 + $0x60] ss:$12 sps:$4 sm:$0xff]  }
  0x7b   : > { %v2787_v20 = vld [vmem:[%s3400_s26 + $0x7c] ss:$12 sps:$4 sm:$0xff]   ;;  %v2789_v22 = vld [vmem:[%s3400_s26 + $0x78] ss:$12 sps:$4 sm:$0xff]   ;;  %v2790_v23 = vld [vmem:[%s3400_s26 + $0x94] ss:$12 sps:$4 sm:$0xff]  }
  0x7c   : > { %v2805_v21 = vld [vmem:[%s3400_s26 + $0x8] ss:$12 sps:$4 sm:$0xff]   ;;  %v2809_v24 = vld [vmem:[%s3400_s26 + $0x20] ss:$12 sps:$4 sm:$0xff]   ;;  %v2810_v25 = vld [vmem:[%s3400_s26 + $0x38] ss:$12 sps:$4 sm:$0xff]  }
  0x7d   : > { %579 = vmatpush1.bf16.msra.mxu0 %v2777_v12  ;;  %2431 = vmatprep.subr.bf16.mxu1 %v2805_v21  ;;  %v2792_v26 = vld [vmem:[%s3400_s26 + $0x90] ss:$12 sps:$4 sm:$0xff]   ;;  %v2793_v27 = vld [vmem:[%s3400_s26 + $0xac] ss:$12 sps:$4 sm:$0xff]   ;;  %v2795_v29 = vld [vmem:[%s3400_s26 + $0xa8] ss:$12 sps:$4 sm:$0xff]  }
  0x7e   : > { %580 = vmatprep.subr.bf16.mxu0 %v2778_v13  ;;  %2432 = vmatpush3.bf16.msra.mxu1 %v2805_v21  ;;  %v2814_v28 = vld [vmem:[%s3400_s26 + $0x50] ss:$12 sps:$4 sm:$0xff]   ;;  %v2815_v31 = vld [vmem:[%s3400_s26 + $0x68] ss:$12 sps:$4 sm:$0xff]   ;;  %v3448_v32 = vld [vmem:[%s3418_s28] ss:$12 sps:$4 sm:$0xff]  }
  0x7f   : > { %2433 = vmatprep.subr.bf16.mxu1 %v2809_v24  ;;  %v3444_v30 = vld [vmem:[%s3418_s28 + $0x4] ss:$12 sps:$4 sm:$0xff]   ;;  %v3452_v33 = vld [vmem:[%s3418_s28 + $0x1c] ss:$12 sps:$4 sm:$0xff]   ;;  %v2819_v34 = vld [vmem:[%s3400_s26 + $0x80] ss:$12 sps:$4 sm:$0xff]  }
  0x80   : > { %v3458_v35 = vld [vmem:[%s3418_s28 + $0x18] ss:$12 sps:$4 sm:$0xff]   ;;  %v3462_v36 = vld [vmem:[%s3418_s28 + $0x34] ss:$12 sps:$4 sm:$0xff]   ;;  %v392_v38 = vld [vmem:[#allocation2 + $0x8] sm:$0xff]  ;;  %v434_v3 = vshrl.u32 %v433_v2, 7 }
  0x81   : > { %581 = vmatpush1.bf16.msra.mxu0 %v2780_v14  ;;  %v2820_v37 = vld [vmem:[%s3400_s26 + $0x98] ss:$12 sps:$4 sm:$0xff]   ;;  %v3467_v39 = vld [vmem:[%s3418_s28 + $0x30] ss:$12 sps:$4 sm:$0xff]   ;;  %v3477_v42 = vld [vmem:[%s3418_s28 + $0x48] ss:$12 sps:$4 sm:$0xff]  }
  0x82   : > { %582 = vmatprep.subr.bf16.mxu0 %v2781_v15  ;;  %2434 = vmatpush3.bf16.msra.mxu1 %v2809_v24  ;;  %v3471_v40 = vld [vmem:[%s3418_s28 + $0x4c] ss:$12 sps:$4 sm:$0xff]   ;;  %v2824_v41 = vld [vmem:[%s3400_s26 + $0xb0] ss:$12 sps:$4 sm:$0xff]   ;;  %v3493_v48 = vld [vmem:[%s3418_s28 + $0x8] ss:$12 sps:$4 sm:$0xff]  }
  0x83   : > { %2435 = vmatprep.subr.bf16.mxu1 %v2810_v25  ;;  %v3481_v43 = vld [vmem:[%s3418_s28 + $0x64] ss:$12 sps:$4 sm:$0xff]   ;;  %v3485_v45 = vld [vmem:[%s3418_s28 + $0x60] ss:$12 sps:$4 sm:$0xff]   ;;  %v3489_v46 = vld [vmem:[%s3418_s28 + $0x7c] ss:$12 sps:$4 sm:$0xff]  }
  0x84   : > { %v393_v44 = vld [vmem:[#allocation2 + $0x10] sm:$0xff]  ;;  %v3498_v49 = vld [vmem:[%s3418_s28 + $0x78] ss:$12 sps:$4 sm:$0xff]   ;;  %v3506_v51 = vld [vmem:[%s3418_s28 + $0x20] ss:$12 sps:$4 sm:$0xff]   ;;  %v443_v4 = vsub.s32 2, %v434_v3 }
  0x85   : > { %583 = vmatpush1.bf16.msra.mxu0 %v2783_v17  ;;  %v3502_v50 = vld [vmem:[%s3418_s28 + $0x94] ss:$12 sps:$4 sm:$0xff]   ;;  %v394_v52 = vld [vmem:[#allocation2 + $0x18] sm:$0xff]  ;;  %v396_v60 = vld [vmem:[#allocation2 + $0x28] sm:$0xff]  ;;  %s3189_s12 = smov [#allocation10]   ;;  %p2719_p6 = scmp.eq.s32.totalorder %s3306_s9, 1 }
  0x86   : > { %584 = vmatprep.subr.bf16.mxu0 %v2784_v18  ;;  %2436 = vmatpush3.bf16.msra.mxu1 %v2810_v25  ;;  %v3511_v53 = vld [vmem:[%s3418_s28 + $0x90] ss:$12 sps:$4 sm:$0xff]   ;;  %v3515_v54 = vld [vmem:[%s3418_s28 + $0xac] ss:$12 sps:$4 sm:$0xff]   ;;  %v3525_v56 = vld [vmem:[%s3418_s28 + $0xa8] ss:$12 sps:$4 sm:$0xff]  }
  0x87   : > { %2437 = vmatprep.subr.bf16.mxu1 %v2814_v28  ;;  %v3519_v55 = vld [vmem:[%s3418_s28 + $0x38] ss:$12 sps:$4 sm:$0xff]   ;;  %v3530_v58 = vld [vmem:[%s3418_s28 + $0x50] ss:$12 sps:$4 sm:$0xff]   ;;  %v3537_v59 = vld [vmem:[%s3418_s28 + $0x68] ss:$12 sps:$4 sm:$0xff]  }
  0x88   : > { %v395_v57 = vld [vmem:[#allocation2 + $0x20] sm:$0xff]  ;;  %v397_v61 = vld [vmem:[#allocation2 + $0x30] sm:$0xff]  ;;  %v398_v0 = vld [vmem:[#allocation2 + $0x38] sm:$0xff]  ;;  %s2119_s10 = sshll.u32 %s3189_s12, 4  ;;  %s2120_s10 = int_to_ptr.vmem [resolvable:$true] %s2119_s10 }
  0x89   : > { %585 = vmatpush1.bf16.msra.mxu0 %v2786_v19  ;;  %v3543_v62 = vld [vmem:[%s3418_s28 + $0x80] ss:$12 sps:$4 sm:$0xff]   ;;  %v3548_v63 = vld [vmem:[%s3418_s28 + $0x98] ss:$12 sps:$4 sm:$0xff]   ;;  %v3554_v1 = vld [vmem:[%s3418_s28 + $0xb0] ss:$12 sps:$4 sm:$0xff]   ;;  %p3116_p7 = scmp.lt.s32.totalorder %s2120_s10, %s2120_s10 }
  0x8a   : > { %586 = vmatprep.subr.bf16.mxu0 %v2787_v20  ;;  %2438 = vmatpush3.bf16.msra.mxu1 %v2814_v28  ;;  %v431_v5 = vld [vmem:[%s3416_s21] sm:$0x7]  ;;  %s3109_s18 = scalar_lea.vmem %s2120_s10, 128 }
  0x8b   : > { %2439 = vmatprep.subr.bf16.mxu1 %v2815_v31  ;;  %v3601_v6 = vrot.slane %v431_v5, %v443_v4  ;;  %v435_v4 = vsub.s32 0, %v434_v3  ;;  %p3110_p0 = scmp.ne.s32.totalorder %s2120_s10, %s3109_s18  ;;  %p3117_p9 = scmp.lt.s32.totalorder %s3109_s18, %s3109_s18 }
  0x8d   : > { %587 = vmatpush1.bf16.msra.mxu0 %v2789_v22  ;;  %p3111_p4 = pnand %p3110_p0, %p2719_p6  ;;  %p3118_p2 = por %p3117_p9, %p3116_p7 }
  0x8e   : > { %588 = vmatprep.subr.bf16.mxu0 %v2790_v23  ;;  %2440 = vmatpush3.bf16.msra.mxu1 %v2815_v31 }
  0x8f   : > { %2441 = vmatprep.subr.bf16.mxu1 %v2819_v34  ;;  %p3112_p1 = pneg %p3111_p4 }
  0x91   : > { %589 = vmatpush1.bf16.msra.mxu0 %v2792_v26  ;;  %p3119_p3 = pnand %p3118_p2, %p3112_p1 }
  0x92   : > { %590 = vmatprep.subr.bf16.mxu0 %v2793_v27  ;;  %2442 = vmatpush3.bf16.msra.mxu1 %v2819_v34 }
  0x93   : > { %2443 = vmatprep.subr.bf16.mxu1 %v2820_v37 }
  0x95   : > { %591 = vmatpush1.bf16.msra.mxu0 %v2795_v29 }
  0x96   : > { %1010 = vmatprep.subr.bf16.mxu0 %v3444_v30  ;;  %2444 = vmatpush3.bf16.msra.mxu1 %v2820_v37 }
  0x97   : > { %2445 = vmatprep.subr.bf16.mxu1 %v2824_v41 }
  0x98   : > { %609 = vmatmul.mubr.bf16.vlgmr.msra.gmra.mrb[0].mxu0 %v391_v16 }
  0x99   : > { %1011 = vmatpush1.bf16.msra.mxu0 %v3448_v32  ;;  %618 = vmatprep.mubr.bf16.mxu0 %v4096_v10 }
  0x9a   : > { %1012 = vmatprep.subr.bf16.mxu0 %v3452_v33  ;;  %2446 = vmatpush3.bf16.msra.mxu1 %v2824_v41 }
  0x9b   : > { %2463 = vmatprep.subr.bf16.mxu1 %v4098_v47 }
  0x9d   : > { %1013 = vmatpush1.bf16.msra.mxu0 %v3458_v35  ;;  %2448 = vmatmul.mubr.bf16.vlgmr.msra.gmra.mrb[0].mxu1 %v392_v38 }
  0x9e   : > { %1014 = vmatprep.subr.bf16.mxu0 %v3462_v36  ;;  %2464 = vmatpush3.bf16.msra.mxu1 %v3493_v48 }
  0x9f   : > { %2451 = vmatprep.mubr.bf16.mxu1 %v393_v44  ;;  %2465 = vmatprep.subr.bf16.mxu1 %v4098_v47 }
  0xa0   : > { %619 = vmatmul.mubr.bf16.gmra.mrb[4].mxu0 %v392_v38 }
  0xa1   : > { %628 = vmatprep.mubr.bf16.mxu0 %v4096_v10  ;;  %1015 = vmatpush1.bf16.msra.mxu0 %v3467_v39 }
  0xa2   : > { %1016 = vmatprep.subr.bf16.mxu0 %v3471_v40  ;;  %2466 = vmatpush3.bf16.msra.mxu1 %v3506_v51 }
  0xa3   : > { %2467 = vmatprep.subr.bf16.mxu1 %v4098_v47 }
  0xa5   : > { %1017 = vmatpush1.bf16.msra.mxu0 %v3477_v42  ;;  %2452 = vmatmul.mubr.bf16.gmra.mrb[4].mxu1 %v394_v52 }
  0xa6   : > { %1018 = vmatprep.subr.bf16.mxu0 %v3481_v43  ;;  %2468 = vmatpush3.bf16.msra.mxu1 %v3519_v55 }
  0xa7   : > { %2455 = vmatprep.mubr.bf16.mxu1 %v395_v57  ;;  %2469 = vmatprep.subr.bf16.mxu1 %v4098_v47 }
  0xa8   : > { %629 = vmatmul.mubr.bf16.gmra.mrb[8].mxu0 %v393_v44 }
  0xa9   : > { %638 = vmatprep.mubr.bf16.mxu0 %v4096_v10  ;;  %1019 = vmatpush1.bf16.msra.mxu0 %v3485_v45 }
  0xaa   : > { %1020 = vmatprep.subr.bf16.mxu0 %v3489_v46  ;;  %2470 = vmatpush3.bf16.msra.mxu1 %v3530_v58 }
  0xab   : > { %2471 = vmatprep.subr.bf16.mxu1 %v4098_v47 }
  0xad   : > { %1021 = vmatpush1.bf16.msra.mxu0 %v3498_v49  ;;  %2456 = vmatmul.mubr.bf16.gmra.mrb[8].mxu1 %v396_v60 }
  0xae   : > { %1022 = vmatprep.subr.bf16.mxu0 %v3502_v50  ;;  %2472 = vmatpush3.bf16.msra.mxu1 %v3537_v59 }
  0xaf   : > { %2459 = vmatprep.mubr.bf16.mxu1 %v397_v61  ;;  %2473 = vmatprep.subr.bf16.mxu1 %v4098_v47 }
  0xb0   : > { %639 = vmatmul.mubr.bf16.gmra.mrb[12].mxu0 %v394_v52 }
  0xb1   : > { %648 = vmatprep.mubr.bf16.mxu0 %v4096_v10  ;;  %1023 = vmatpush1.bf16.msra.mxu0 %v3511_v53 }
  0xb2   : > { %1024 = vmatprep.subr.bf16.mxu0 %v3515_v54  ;;  %2474 = vmatpush3.bf16.msra.mxu1 %v3543_v62 }
  0xb3   : > { %2475 = vmatprep.subr.bf16.mxu1 %v4098_v47 }
  0xb5   : > { %1025 = vmatpush1.bf16.msra.mxu0 %v3525_v56  ;;  %2460 = vmatmul.mubr.bf16.gmra.mrb[12].mxu1 %v398_v0 }
  0xb6   : > { %1147 = vmatprep.subr.bf16.mxu0 %v3444_v30  ;;  %2476 = vmatpush3.bf16.msra.mxu1 %v3548_v63 }
  0xb7   : > { %2479 = vmatprep.mubr.msk.bf16.mxu1 %vm3188_vm0, %v4098_v47  ;;  %2477 = vmatprep.subr.bf16.mxu1 %v4098_v47 }
  0xb8   : > { %649 = vmatmul.mubr.bf16.gmra.mrb[16].mxu0 %v395_v57 }
  0xb9   : > { %658 = vmatprep.mubr.bf16.mxu0 %v4096_v10 }
  0xba   : > { %2478 = vmatpush3.bf16.msra.mxu1 %v3554_v1 }
  0xbb   : > { %2483 = vmatprep.subr.bf16.mxu1 %v4098_v47 }
  0xbd   : > { %2480 = vmatmul.mubr.bf16.vlgmr.msra.gmra.mrb[16].mxu1 %v4096_v10 }
  0xbe   : > { %2484 = vmatpush3.bf16.msra.mxu1 %v3493_v48  ;;  %2499 = vmatprep.mubr.msk.bf16.mxu1 %vm3188_vm0, %v4098_v47 }
  0xbf   : > { %2485 = vmatprep.subr.bf16.mxu1 %v4098_v47 }
  0xc0   : > { %659 = vmatmul.mubr.bf16.gmra.mrb[20].mxu0 %v396_v60 }
  0xc1   : > { %668 = vmatprep.mubr.bf16.mxu0 %v4096_v10 }
  0xc2   : > { %2486 = vmatpush3.bf16.msra.mxu1 %v3506_v51 }
  0xc3   : > { %2487 = vmatprep.subr.bf16.mxu1 %v4098_v47 }
  0xc6   : > { %2488 = vmatpush3.bf16.msra.mxu1 %v3519_v55 }
  0xc7   : > { %2489 = vmatprep.subr.bf16.mxu1 %v4098_v47 }
  0xc8   : > { %669 = vmatmul.mubr.bf16.gmra.mrb[24].mxu0 %v397_v61 }
  0xc9   : > { %678 = vmatprep.mubr.bf16.mxu0 %v4096_v10 }
  0xca   : > { %2490 = vmatpush3.bf16.msra.mxu1 %v3530_v58 }
  0xcb   : > { %2491 = vmatprep.subr.bf16.mxu1 %v4098_v47 }
  0xce   : > { %2492 = vmatpush3.bf16.msra.mxu1 %v3537_v59 }
  0xcf   : > { %2493 = vmatprep.subr.bf16.mxu1 %v4098_v47 }
  0xd0   : > { %679 = vmatmul.mubr.bf16.gmra.mrb[28].mxu0 %v398_v0 }
  0xd1   : > { %1042 = vmatprep.mubr.bf16.mxu0 %v4096_v10 }
  0xd2   : > { %2494 = vmatpush3.bf16.msra.mxu1 %v3543_v62 }
  0xd3   : > { %2495 = vmatprep.subr.bf16.mxu1 %v4098_v47 }
  0xd6   : > { %2496 = vmatpush3.bf16.msra.mxu1 %v3548_v63 }
  0xd7   : > { %2497 = vmatprep.subr.bf16.mxu1 %v4098_v47 }
  0xd8   : > { %1043 = vmatmul.mubr.bf16.vlgmr.msra.gmra.mrb[0].mxu0 %v4096_v10 }
  0xd9   : > { %1148 = vmatpush1.bf16.msra.mxu0 %v3448_v32  ;;  %1179 = vmatprep.mubr.bf16.mxu0 %v4096_v10 }
  0xda   : > { %1149 = vmatprep.subr.bf16.mxu0 %v3452_v33  ;;  %2498 = vmatpush3.bf16.msra.mxu1 %v3554_v1 }
  0xdb   : > { %2503 = vmatprep.subr.bf16.mxu1 %v4098_v47 }
  0xdd   : > { %1150 = vmatpush1.bf16.msra.mxu0 %v3458_v35 }
  0xde   : > { %1151 = vmatprep.subr.bf16.mxu0 %v3462_v36 }
  0xe1   : > { %1152 = vmatpush1.bf16.msra.mxu0 %v3467_v39 }
  0xe2   : > { %1153 = vmatprep.subr.bf16.mxu0 %v3471_v40 }
  0xe5   : > { %1154 = vmatpush1.bf16.msra.mxu0 %v3477_v42 }
  0xe6   : > { %1155 = vmatprep.subr.bf16.mxu0 %v3481_v43 }
  0xe9   : > { %1156 = vmatpush1.bf16.msra.mxu0 %v3485_v45 }
  0xea   : > { %1157 = vmatprep.subr.bf16.mxu0 %v3489_v46 }
  0xed   : > { %1158 = vmatpush1.bf16.msra.mxu0 %v3498_v49 }
  0xee   : > { %1159 = vmatprep.subr.bf16.mxu0 %v3502_v50 }
  0xf1   : > { %1160 = vmatpush1.bf16.msra.mxu0 %v3511_v53 }
  0xf2   : > { %1161 = vmatprep.subr.bf16.mxu0 %v3515_v54 }
  0xf5   : > { %1162 = vmatpush1.bf16.msra.mxu0 %v3525_v56 }
  0xf6   : > { %1285 = vmatprep.subr.bf16.mxu0 %v3444_v30 }
 0x170   : > { %v2449_v7 = vpop.f32.mrb[0].mxu1 }
 0x171   : > { %v3604_v8 = vadd.f32 %v2449_v7, %v3601_v6  ;;  %v3606_v9 = vpop.f32.mrb[1].mxu1  ;;  %v3649_v7 = vrot.slane %v431_v5, %v435_v4 }
 0x172   : > { %v2450_v11 = vpop.f32.mrb[2].mxu1 }
 0x173   : > { %v3609_v12 = vadd.f32 %v2450_v11, %v3601_v6  ;;  %v3611_v13 = vpop.f32.mrb[3].mxu1 }
 0x178   : > { %v2453_v14 = vpop.f32.mrb[4].mxu1 }
 0x179   : > { %v3614_v15 = vadd.f32 %v2453_v14, %v3601_v6  ;;  %v739_v16 = vpop.f32.mrb[5].mxu1 }
 0x17a   : > { %v3617_v17 = vadd.f32 %v739_v16, %v3601_v6  ;;  %v2454_v18 = vpop.f32.mrb[6].mxu1  ;;  %v439_v16 = vsub.s32 1, %v434_v3 }
 0x17b   : > { %v3620_v19 = vadd.f32 %v2454_v18, %v3601_v6  ;;  %v742_v20 = vpop.f32.mrb[7].mxu1 }
 0x17c   : > { %v3623_v21 = vadd.f32 %v742_v20, %v3601_v6 }
 0x180   : > { %v2457_v22 = vpop.f32.mrb[8].mxu1 }
 0x181   : > { %v3626_v23 = vadd.f32 %v2457_v22, %v3601_v6  ;;  %v755_v24 = vpop.f32.mrb[9].mxu1 }
 0x182   : > { %v3629_v25 = vadd.f32 %v755_v24, %v3601_v6  ;;  %v2458_v26 = vpop.f32.mrb[10].mxu1 }
 0x183   : > { %v3632_v27 = vadd.f32 %v2458_v26, %v3601_v6  ;;  %v758_v28 = vpop.f32.mrb[11].mxu1 }
 0x184   : > { %v3635_v29 = vadd.f32 %v758_v28, %v3601_v6  ;;  %v3653_v28 = vrot.slane %v431_v5, %v439_v16 }
 0x188   : > { %v2461_v31 = vpop.f32.mrb[12].mxu1 }
 0x189   : > { %v3638_v34 = vadd.f32 %v2461_v31, %v3601_v6  ;;  %v771_v37 = vpop.f32.mrb[13].mxu1 }
 0x18a   : > { %v3641_v38 = vadd.f32 %v771_v37, %v3601_v6  ;;  %v2462_v41 = vpop.f32.mrb[14].mxu1 }
 0x18b   : > { %v3644_v44 = vadd.f32 %v2462_v41, %v3601_v6  ;;  %v774_v52 = vpop.f32.mrb[15].mxu1 }
 0x18c   : > { %v3647_v57 = vadd.f32 %v774_v52, %v3601_v6 }
 0x190   : > { %v1087_v60 = vpop.f32.mrb[16].mxu1 }
 0x191   : > { %v2481_v61 = vpop.f32.mrb[17].mxu1 }
 0x192   : > { %v1090_v0 = vpop.f32.mrb[18].mxu1 }
 0x193   : > { %v2482_v2 = vpop.f32.mrb[19].mxu1 }
 0x1ab   : > { %v1044_v11 = vpop.f32.mrb[0].mxu0 }
 0x1ac   : > { %v2623_v14 = vadd.f32 %v1044_v11, %v3649_v7  ;;  %v1046_v18 = vpop.f32.mrb[1].mxu0 }
 0x1ad   : > { %v1048_v20 = vpop.f32.mrb[2].mxu0  ;;  %v2624_v37 = vadd.f32 %v1046_v18, %v3653_v28  ;;  %v724_v18 = vadd.f32 %v3606_v9, %v3601_v6 }
 0x1ae   : > { %v2298_v22 = vmul.f32 -1.442695, %v2623_v14  ;;  %v2625_v24 = vadd.f32 %v1048_v20, %v3649_v7  ;;  %v1050_v26 = vpop.f32.mrb[3].mxu0  ;;  %v3658_v14 = vld [vmem:[%s3411_s23] ss:$0 sm:$0xff] }
 0x1af   : > { %v2626_v41 = vadd.f32 %v1050_v26, %v3653_v28  ;;  %v2300_v52 = vmul.f32 -1.442695, %v2624_v37  ;;  %v1122_v5 = vadd.f32 %v3658_v14, %v1087_v60  ;;  %v1123_v26 = vadd.f32 %v3658_v14, %v1090_v0 }
 0x1b0   : > { %2836 = vpow2.f32 %v2298_v22  ;;  %v2299_v31 = vmul.f32 -1.442695, %v2625_v24 }
 0x1b1   : > { %v2301_v2 = vmul.f32 -1.442695, %v2626_v41  ;;  %v727_v41 = vadd.f32 %v3611_v13, %v3601_v6  ;;  %v4113_v13 = vmov 0.0  }
 0x1b2   : > { %2838 = vpow2.f32 %v2299_v31 }
 0x1b3   : > { %2840 = vpow2.f32 %v2300_v52 }
 0x1ba   : > { %v2837_v61 = vpop.eup %2836 }
 0x1bb   : > { %v1102_v3 = vadd.f32 1.0, %v2837_v61 }
 0x1bc   : > { %v2839_v4 = vpop.eup %2838 }
 0x1bd   : > { %2842 = vrcp.f32 %v1102_v3  ;;  %v1103_v11 = vadd.f32 1.0, %v2839_v4  ;;  %v2841_v16 = vpop.eup %2840 }
 0x1be   : > { %2844 = vpow2.f32 %v2301_v2  ;;  %v1116_v37 = vadd.f32 1.0, %v2841_v16 }
 0x1bf   : > { %2846 = vrcp.f32 %v1103_v11 }
 0x1c7   : > { %v2843_v20 = vpop.eup %2842 }
 0x1c8   : > { %v2845_v22 = vpop.eup %2844  ;;  %v1124_v24 = vmul.f32 %v2843_v20, %v1122_v5 }
 0x1c9   : > { %v2847_v31 = vpop.eup %2846  ;;  %v1117_v2 = vadd.f32 1.0, %v2845_v22  ;;  %v4114_v22 = vmov 0  }
 0x1ca   : > { %v1126_v52 = vadd.f32 %v1124_v24, %v724_v18  ;;  %v1125_v61 = vmul.f32 %v2847_v31, %v1123_v26 }
 0x1cc   : > { %2848 = vtanh.f32 %v1126_v52  ;;  %v1127_v3 = vadd.f32 %v1125_v61, %v727_v41 }
 0x1cd   : > { %2850 = vrcp.f32 %v1116_v37 }
 0x1ce   : > { %2852 = vtanh.f32 %v1127_v3 }
 0x1cf   : > { %2854 = vrcp.f32 %v1117_v2 }
 0x1d6   : > { %v2849_v60 = vpop.eup %2848 }
 0x1d7   : > { %v2851_v4 = vpop.eup %2850  ;;  %v1130_v11 = vsub.f32 0.0, %v2849_v60 }
 0x1d8   : > { %v2853_v9 = vpop.eup %2852 }
 0x1d9   : > { %v1131_v5 = vsub.f32 0.0, %v2853_v9  ;;  %v1132_v20 = vmul.f32 %v2851_v4, %v1130_v11  ;;  %v2855_v0 = vpop.eup %2854 }
 0x1db   : > { %v1133_v10 = vmul.f32 %v2855_v0, %v1131_v5  ;;  %v3666_v16 = vadd.f32 %v2849_v60, %v1132_v20 }
 0x1dd   : > { %v3668_v47 = vadd.f32 %v2853_v9, %v1133_v10 }
 0x1df   : > { %v1136_v6 = vpack.c.bf16 %v3668_v47, %v3666_v16 }
 0x1e1   : > { %1137 = vst [vmem:[#allocation2] sm:$0xff] %v1136_v6  ;;  %1180 = vmatmul.mubr.bf16.vlgmr.msra.gmra.mrb[4].mxu0 %v1136_v6  ;;  %2500 = vmatmul.mubr.bf16.vlgmr.msra.gmra.mrb[20].mxu1 %v1136_v6 }
 0x1e2   : > { %1286 = vmatpush1.bf16.msra.mxu0 %v3448_v32  ;;  %2504 = vmatpush3.bf16.msra.mxu1 %v3493_v48 }
 0x1e3   : > { %1287 = vmatprep.subr.bf16.mxu0 %v3452_v33  ;;  %2505 = vmatprep.subr.bf16.mxu1 %v4113_v13 }
 0x1e4   : > { %1317 = vmatprep.mubr.bf16.mxu0 %v4114_v22  ;;  %2519 = vmatprep.mubr.msk.bf16.mxu1 %vm3188_vm0, %v4113_v13 }
 0x1e6   : > { %1288 = vmatpush1.bf16.msra.mxu0 %v3458_v35  ;;  %2506 = vmatpush3.bf16.msra.mxu1 %v3506_v51 }
 0x1e7   : > { %1289 = vmatprep.subr.bf16.mxu0 %v3462_v36  ;;  %2507 = vmatprep.subr.bf16.mxu1 %v4113_v13 }
 0x1ea   : > { %1290 = vmatpush1.bf16.msra.mxu0 %v3467_v39  ;;  %2508 = vmatpush3.bf16.msra.mxu1 %v3519_v55 }
 0x1eb   : > { %1291 = vmatprep.subr.bf16.mxu0 %v3471_v40  ;;  %2509 = vmatprep.subr.bf16.mxu1 %v4113_v13 }
 0x1ee   : > { %1292 = vmatpush1.bf16.msra.mxu0 %v3477_v42  ;;  %2510 = vmatpush3.bf16.msra.mxu1 %v3530_v58 }
 0x1ef   : > { %1293 = vmatprep.subr.bf16.mxu0 %v3481_v43  ;;  %2511 = vmatprep.subr.bf16.mxu1 %v4113_v13 }
 0x1f2   : > { %1294 = vmatpush1.bf16.msra.mxu0 %v3485_v45  ;;  %2512 = vmatpush3.bf16.msra.mxu1 %v3537_v59 }
 0x1f3   : > { %1295 = vmatprep.subr.bf16.mxu0 %v3489_v46  ;;  %2513 = vmatprep.subr.bf16.mxu1 %v4113_v13 }
 0x1f6   : > { %1296 = vmatpush1.bf16.msra.mxu0 %v3498_v49  ;;  %2514 = vmatpush3.bf16.msra.mxu1 %v3543_v62 }
 0x1f7   : > { %1297 = vmatprep.subr.bf16.mxu0 %v3502_v50  ;;  %2515 = vmatprep.subr.bf16.mxu1 %v4113_v13 }
 0x1fa   : > { %1298 = vmatpush1.bf16.msra.mxu0 %v3511_v53  ;;  %2516 = vmatpush3.bf16.msra.mxu1 %v3548_v63 }
 0x1fb   : > { %1299 = vmatprep.subr.bf16.mxu0 %v3515_v54  ;;  %2517 = vmatprep.subr.bf16.mxu1 %v4113_v13 }
 0x1fe   : > { %1300 = vmatpush1.bf16.msra.mxu0 %v3525_v56  ;;  %2518 = vmatpush3.bf16.msra.mxu1 %v3554_v1 }
 0x1ff   : > { %1423 = vmatprep.subr.bf16.mxu0 %v3444_v30  ;;  %2523 = vmatprep.subr.bf16.mxu1 %v4113_v13 }
 0x2b4   : > { %v1181_v10 = vpop.f32.mrb[4].mxu0  ;;  %v1224_v18 = vpop.f32.mrb[20].mxu1 }
 0x2b5   : > { %v2627_v24 = vadd.f32 %v1181_v10, %v3649_v7  ;;  %v1183_v26 = vpop.f32.mrb[5].mxu0  ;;  %v2501_v31 = vpop.f32.mrb[21].mxu1 }
 0x2b6   : > { %v1185_v37 = vpop.f32.mrb[6].mxu0  ;;  %v1227_v41 = vpop.f32.mrb[22].mxu1  ;;  %v2628_v4 = vadd.f32 %v1183_v26, %v3653_v28  ;;  %v1259_v31 = vadd.f32 %v3658_v14, %v1224_v18 }
 0x2b7   : > { %v2302_v52 = vmul.f32 -1.442695, %v2627_v24  ;;  %v2629_v61 = vadd.f32 %v1185_v37, %v3649_v7  ;;  %v1187_v2 = vpop.f32.mrb[7].mxu0  ;;  %v2502_v3 = vpop.f32.mrb[23].mxu1  ;;  %v1260_v26 = vadd.f32 %v3658_v14, %v1227_v41 }
 0x2b8   : > { %v2630_v11 = vadd.f32 %v1187_v2, %v3653_v28  ;;  %v2304_v9 = vmul.f32 -1.442695, %v2628_v4 }
 0x2b9   : > { %2856 = vpow2.f32 %v2302_v52  ;;  %v2303_v60 = vmul.f32 -1.442695, %v2629_v61 }
 0x2ba   : > { %v2305_v20 = vmul.f32 -1.442695, %v2630_v11 }
 0x2bb   : > { %2858 = vpow2.f32 %v2303_v60 }
 0x2bc   : > { %2860 = vpow2.f32 %v2304_v9 }
 0x2c3   : > { %v2857_v5 = vpop.eup %2856 }
 0x2c4   : > { %v1239_v0 = vadd.f32 1.0, %v2857_v5 }
 0x2c5   : > { %v2859_v6 = vpop.eup %2858 }
 0x2c6   : > { %2862 = vrcp.f32 %v1239_v0  ;;  %v1240_v10 = vadd.f32 1.0, %v2859_v6  ;;  %v2861_v24 = vpop.eup %2860 }
 0x2c7   : > { %2864 = vpow2.f32 %v2305_v20  ;;  %v1253_v2 = vadd.f32 1.0, %v2861_v24 }
 0x2c8   : > { %2866 = vrcp.f32 %v1240_v10 }
 0x2d0   : > { %v2863_v37 = vpop.eup %2862 }
 0x2d1   : > { %v2865_v52 = vpop.eup %2864  ;;  %v1261_v61 = vmul.f32 %v2863_v37, %v1259_v31 }
 0x2d2   : > { %v2867_v3 = vpop.eup %2866  ;;  %v1254_v9 = vadd.f32 1.0, %v2865_v52 }
 0x2d3   : > { %v1263_v60 = vadd.f32 %v1261_v61, %v3604_v8  ;;  %v1262_v4 = vmul.f32 %v2867_v3, %v1260_v26 }
 0x2d5   : > { %2868 = vtanh.f32 %v1263_v60  ;;  %v1264_v11 = vadd.f32 %v1262_v4, %v3609_v12 }
 0x2d6   : > { %2870 = vrcp.f32 %v1253_v2 }
 0x2d7   : > { %2872 = vtanh.f32 %v1264_v11 }
 0x2d8   : > { %2874 = vrcp.f32 %v1254_v9 }
 0x2df   : > { %v2869_v5 = vpop.eup %2868 }
 0x2e0   : > { %v2871_v20 = vpop.eup %2870  ;;  %v1267_v18 = vsub.f32 %v3666_v16, %v2869_v5 }
 0x2e1   : > { %v2873_v0 = vpop.eup %2872 }
 0x2e2   : > { %v1268_v6 = vsub.f32 %v3668_v47, %v2873_v0  ;;  %v1269_v41 = vmul.f32 %v2871_v20, %v1267_v18  ;;  %v2875_v10 = vpop.eup %2874 }
 0x2e4   : > { %v1270_v24 = vmul.f32 %v2875_v10, %v1268_v6  ;;  %v3717_v31 = vadd.f32 %v2869_v5, %v1269_v41 }
 0x2e6   : > { %v3719_v8 = vadd.f32 %v2873_v0, %v1270_v24 }
 0x2e8   : > { %v1273_v12 = vpack.c.bf16 %v3719_v8, %v3717_v31 }
 0x2ea   : > { %1275 = vst [vmem:[#allocation2 + $0x8] sm:$0xff] %v1273_v12  ;;  %1318 = vmatmul.mubr.bf16.vlgmr.msra.gmra.mrb[8].mxu0 %v1273_v12  ;;  %2520 = vmatmul.mubr.bf16.vlgmr.msra.gmra.mrb[24].mxu1 %v1273_v12 }
 0x2eb   : > { %1424 = vmatpush1.bf16.msra.mxu0 %v3448_v32  ;;  %2524 = vmatpush3.bf16.msra.mxu1 %v3493_v48 }
 0x2ec   : > { %1425 = vmatprep.subr.bf16.mxu0 %v3452_v33  ;;  %2525 = vmatprep.subr.bf16.mxu1 %v4113_v13 }
 0x2ed   : > { %1455 = vmatprep.mubr.bf16.mxu0 %v4114_v22  ;;  %2539 = vmatprep.mubr.msk.bf16.mxu1 %vm3188_vm0, %v4113_v13 }
 0x2ef   : > { %1426 = vmatpush1.bf16.msra.mxu0 %v3458_v35  ;;  %2526 = vmatpush3.bf16.msra.mxu1 %v3506_v51 }
 0x2f0   : > { %1427 = vmatprep.subr.bf16.mxu0 %v3462_v36  ;;  %2527 = vmatprep.subr.bf16.mxu1 %v4113_v13 }
 0x2f3   : > { %1428 = vmatpush1.bf16.msra.mxu0 %v3467_v39  ;;  %2528 = vmatpush3.bf16.msra.mxu1 %v3519_v55 }
 0x2f4   : > { %1429 = vmatprep.subr.bf16.mxu0 %v3471_v40  ;;  %2529 = vmatprep.subr.bf16.mxu1 %v4113_v13 }
 0x2f7   : > { %1430 = vmatpush1.bf16.msra.mxu0 %v3477_v42  ;;  %2530 = vmatpush3.bf16.msra.mxu1 %v3530_v58 }
 0x2f8   : > { %1431 = vmatprep.subr.bf16.mxu0 %v3481_v43  ;;  %2531 = vmatprep.subr.bf16.mxu1 %v4113_v13 }
 0x2fb   : > { %1432 = vmatpush1.bf16.msra.mxu0 %v3485_v45  ;;  %2532 = vmatpush3.bf16.msra.mxu1 %v3537_v59 }
 0x2fc   : > { %1433 = vmatprep.subr.bf16.mxu0 %v3489_v46  ;;  %2533 = vmatprep.subr.bf16.mxu1 %v4113_v13 }
 0x2ff   : > { %1434 = vmatpush1.bf16.msra.mxu0 %v3498_v49  ;;  %2534 = vmatpush3.bf16.msra.mxu1 %v3543_v62 }
 0x300   : > { %1435 = vmatprep.subr.bf16.mxu0 %v3502_v50  ;;  %2535 = vmatprep.subr.bf16.mxu1 %v4113_v13 }
 0x303   : > { %1436 = vmatpush1.bf16.msra.mxu0 %v3511_v53  ;;  %2536 = vmatpush3.bf16.msra.mxu1 %v3548_v63 }
 0x304   : > { %1437 = vmatprep.subr.bf16.mxu0 %v3515_v54  ;;  %2537 = vmatprep.subr.bf16.mxu1 %v4113_v13 }
 0x307   : > { %1438 = vmatpush1.bf16.msra.mxu0 %v3525_v56  ;;  %2538 = vmatpush3.bf16.msra.mxu1 %v3554_v1 }
 0x308   : > { %1561 = vmatprep.subr.bf16.mxu0 %v3444_v30  ;;  %2543 = vmatprep.subr.bf16.mxu1 %v4113_v13 }
 0x3bd   : > { %v1319_v47 = vpop.f32.mrb[8].mxu0  ;;  %v1362_v16 = vpop.f32.mrb[24].mxu1 }
 0x3be   : > { %v2631_v37 = vadd.f32 %v1319_v47, %v3649_v7  ;;  %v1321_v52 = vpop.f32.mrb[9].mxu0  ;;  %v2521_v61 = vpop.f32.mrb[25].mxu1  ;;  %v1397_v47 = vadd.f32 %v3658_v14, %v1362_v16 }
 0x3bf   : > { %v1323_v26 = vpop.f32.mrb[10].mxu0  ;;  %v1365_v3 = vpop.f32.mrb[26].mxu1  ;;  %v2632_v5 = vadd.f32 %v1321_v52, %v3653_v28 }
 0x3c0   : > { %v2306_v2 = vmul.f32 -1.442695, %v2631_v37  ;;  %v2633_v60 = vadd.f32 %v1323_v26, %v3649_v7  ;;  %v1325_v4 = vpop.f32.mrb[11].mxu0  ;;  %v2522_v11 = vpop.f32.mrb[27].mxu1  ;;  %v1398_v52 = vadd.f32 %v3658_v14, %v1365_v3 }
 0x3c1   : > { %v2634_v20 = vadd.f32 %v1325_v4, %v3653_v28  ;;  %v2308_v18 = vmul.f32 -1.442695, %v2632_v5 }
 0x3c2   : > { %2876 = vpow2.f32 %v2306_v2  ;;  %v2307_v9 = vmul.f32 -1.442695, %v2633_v60 }
 0x3c3   : > { %v2309_v6 = vmul.f32 -1.442695, %v2634_v20 }
 0x3c4   : > { %2878 = vpow2.f32 %v2307_v9 }
 0x3c5   : > { %2880 = vpow2.f32 %v2308_v18 }
 0x3cc   : > { %v2877_v0 = vpop.eup %2876 }
 0x3cd   : > { %v1377_v41 = vadd.f32 1.0, %v2877_v0 }
 0x3ce   : > { %v2879_v10 = vpop.eup %2878 }
 0x3cf   : > { %2882 = vrcp.f32 %v1377_v41  ;;  %v1378_v24 = vadd.f32 1.0, %v2879_v10  ;;  %v2881_v12 = vpop.eup %2880 }
 0x3d0   : > { %2884 = vpow2.f32 %v2309_v6  ;;  %v1391_v60 = vadd.f32 1.0, %v2881_v12 }
 0x3d1   : > { %2886 = vrcp.f32 %v1378_v24 }
 0x3d9   : > { %v2883_v37 = vpop.eup %2882 }
 0x3da   : > { %v2885_v61 = vpop.eup %2884  ;;  %v1399_v26 = vmul.f32 %v2883_v37, %v1397_v47 }
 0x3db   : > { %v2887_v2 = vpop.eup %2886  ;;  %v1392_v5 = vadd.f32 1.0, %v2885_v61 }
 0x3dc   : > { %v1401_v4 = vadd.f32 %v1399_v26, %v3617_v17  ;;  %v1400_v11 = vmul.f32 %v2887_v2, %v1398_v52 }
 0x3de   : > { %2888 = vtanh.f32 %v1401_v4  ;;  %v1402_v9 = vadd.f32 %v1400_v11, %v3623_v21 }
 0x3df   : > { %2890 = vrcp.f32 %v1391_v60 }
 0x3e0   : > { %2892 = vtanh.f32 %v1402_v9 }
 0x3e1   : > { %2894 = vrcp.f32 %v1392_v5 }
 0x3e8   : > { %v2889_v20 = vpop.eup %2888 }
 0x3e9   : > { %v2891_v18 = vpop.eup %2890  ;;  %v1405_v16 = vsub.f32 %v3717_v31, %v2889_v20 }
 0x3ea   : > { %v2893_v0 = vpop.eup %2892 }
 0x3eb   : > { %v1406_v6 = vsub.f32 %v3719_v8, %v2893_v0  ;;  %v1407_v3 = vmul.f32 %v2891_v18, %v1405_v16  ;;  %v2895_v41 = vpop.eup %2894 }
 0x3ed   : > { %v1408_v10 = vmul.f32 %v2895_v41, %v1406_v6  ;;  %v3768_v24 = vadd.f32 %v2889_v20, %v1407_v3 }
 0x3ef   : > { %v3770_v17 = vadd.f32 %v2893_v0, %v1408_v10 }
 0x3f1   : > { %v1411_v21 = vpack.c.bf16 %v3770_v17, %v3768_v24 }
 0x3f3   : > { %1413 = vst [vmem:[#allocation2 + $0x10] sm:$0xff] %v1411_v21  ;;  %1456 = vmatmul.mubr.bf16.vlgmr.msra.gmra.mrb[12].mxu0 %v1411_v21  ;;  %2540 = vmatmul.mubr.bf16.vlgmr.msra.gmra.mrb[28].mxu1 %v1411_v21 }
 0x3f4   : > { %1562 = vmatpush1.bf16.msra.mxu0 %v3448_v32  ;;  %2544 = vmatpush3.bf16.msra.mxu1 %v3493_v48 }
 0x3f5   : > { %1563 = vmatprep.subr.bf16.mxu0 %v3452_v33  ;;  %2545 = vmatprep.subr.bf16.mxu1 %v4113_v13 }
 0x3f6   : > { %1593 = vmatprep.mubr.bf16.mxu0 %v4114_v22  ;;  %2559 = vmatprep.mubr.msk.bf16.mxu1 %vm3188_vm0, %v4113_v13 }
 0x3f8   : > { %1564 = vmatpush1.bf16.msra.mxu0 %v3458_v35  ;;  %2546 = vmatpush3.bf16.msra.mxu1 %v3506_v51 }
 0x3f9   : > { %1565 = vmatprep.subr.bf16.mxu0 %v3462_v36  ;;  %2547 = vmatprep.subr.bf16.mxu1 %v4113_v13 }
 0x3fc   : > { %1566 = vmatpush1.bf16.msra.mxu0 %v3467_v39  ;;  %2548 = vmatpush3.bf16.msra.mxu1 %v3519_v55 }
 0x3fd   : > { %1567 = vmatprep.subr.bf16.mxu0 %v3471_v40  ;;  %2549 = vmatprep.subr.bf16.mxu1 %v4113_v13 }
 0x400   : > { %1568 = vmatpush1.bf16.msra.mxu0 %v3477_v42  ;;  %2550 = vmatpush3.bf16.msra.mxu1 %v3530_v58 }
 0x401   : > { %1569 = vmatprep.subr.bf16.mxu0 %v3481_v43  ;;  %2551 = vmatprep.subr.bf16.mxu1 %v4113_v13 }
 0x404   : > { %1570 = vmatpush1.bf16.msra.mxu0 %v3485_v45  ;;  %2552 = vmatpush3.bf16.msra.mxu1 %v3537_v59 }
 0x405   : > { %1571 = vmatprep.subr.bf16.mxu0 %v3489_v46  ;;  %2553 = vmatprep.subr.bf16.mxu1 %v4113_v13 }
 0x408   : > { %1572 = vmatpush1.bf16.msra.mxu0 %v3498_v49  ;;  %2554 = vmatpush3.bf16.msra.mxu1 %v3543_v62 }
 0x409   : > { %1573 = vmatprep.subr.bf16.mxu0 %v3502_v50  ;;  %2555 = vmatprep.subr.bf16.mxu1 %v4113_v13 }
 0x40c   : > { %1574 = vmatpush1.bf16.msra.mxu0 %v3511_v53  ;;  %2556 = vmatpush3.bf16.msra.mxu1 %v3548_v63 }
 0x40d   : > { %1575 = vmatprep.subr.bf16.mxu0 %v3515_v54  ;;  %2557 = vmatprep.subr.bf16.mxu1 %v4113_v13 }
 0x410   : > { %1576 = vmatpush1.bf16.msra.mxu0 %v3525_v56  ;;  %2558 = vmatpush3.bf16.msra.mxu1 %v3554_v1 }
 0x411   : > { %1699 = vmatprep.subr.bf16.mxu0 %v3444_v30  ;;  %2563 = vmatprep.subr.bf16.mxu1 %v4113_v13 }
 0x4c6   : > { %v1457_v32 = vpop.f32.mrb[12].mxu0  ;;  %v1500_v33 = vpop.f32.mrb[28].mxu1 }
 0x4c7   : > { %v2635_v35 = vadd.f32 %v1457_v32, %v3649_v7  ;;  %v1459_v31 = vpop.f32.mrb[13].mxu0  ;;  %v2541_v8 = vpop.f32.mrb[29].mxu1  ;;  %v1535_v0 = vadd.f32 %v3658_v14, %v1500_v33 }
 0x4c8   : > { %v1461_v12 = vpop.f32.mrb[14].mxu0  ;;  %v1503_v47 = vpop.f32.mrb[30].mxu1  ;;  %v2636_v30 = vadd.f32 %v1459_v31, %v3653_v28 }
 0x4c9   : > { %v2310_v37 = vmul.f32 -1.442695, %v2635_v35  ;;  %v2637_v61 = vadd.f32 %v1461_v12, %v3649_v7  ;;  %v1463_v26 = vpop.f32.mrb[15].mxu0  ;;  %v2542_v52 = vpop.f32.mrb[31].mxu1  ;;  %v1536_v10 = vadd.f32 %v3658_v14, %v1503_v47 }
 0x4ca   : > { %v2638_v60 = vadd.f32 %v1463_v26, %v3653_v28  ;;  %v2312_v4 = vmul.f32 -1.442695, %v2636_v30 }
 0x4cb   : > { %2896 = vpow2.f32 %v2310_v37  ;;  %v2311_v2 = vmul.f32 -1.442695, %v2637_v61 }
 0x4cc   : > { %v2313_v9 = vmul.f32 -1.442695, %v2638_v60 }
 0x4cd   : > { %2898 = vpow2.f32 %v2311_v2 }
 0x4ce   : > { %2900 = vpow2.f32 %v2312_v4  ;;  %v3826_v4 = vld [vmem:[%s3418_s28] ss:$12 sps:$4 sm:$0xff]  }
 0x4d5   : > { %v2897_v11 = vpop.eup %2896 }
 0x4d6   : > { %v1515_v5 = vadd.f32 1.0, %v2897_v11 }
 0x4d7   : > { %v2899_v20 = vpop.eup %2898 }
 0x4d8   : > { %2902 = vrcp.f32 %v1515_v5  ;;  %v1516_v18 = vadd.f32 1.0, %v2899_v20  ;;  %v2901_v16 = vpop.eup %2900 }
 0x4d9   : > { %2904 = vpow2.f32 %v2313_v9  ;;  %v1529_v32 = vadd.f32 1.0, %v2901_v16 }
 0x4da   : > { %2906 = vrcp.f32 %v1516_v18 }
 0x4e2   : > { %v2903_v6 = vpop.eup %2902 }
 0x4e3   : > { %v2905_v3 = vpop.eup %2904  ;;  %v1537_v41 = vmul.f32 %v2903_v6, %v1535_v0 }
 0x4e4   : > { %v2907_v21 = vpop.eup %2906  ;;  %v1530_v12 = vadd.f32 1.0, %v2905_v3 }
 0x4e5   : > { %v1539_v35 = vadd.f32 %v1537_v41, %v3614_v15  ;;  %v1538_v31 = vmul.f32 %v2907_v21, %v1536_v10 }
 0x4e7   : > { %2908 = vtanh.f32 %v1539_v35  ;;  %v1540_v8 = vadd.f32 %v1538_v31, %v3620_v19 }
 0x4e8   : > { %2910 = vrcp.f32 %v1529_v32 }
 0x4e9   : > { %2912 = vtanh.f32 %v1540_v8 }
 0x4ea   : > { %2914 = vrcp.f32 %v1530_v12 }
 0x4f1   : > { %v2909_v37 = vpop.eup %2908 }
 0x4f2   : > { %v2911_v33 = vpop.eup %2910  ;;  %v1543_v61 = vsub.f32 %v3768_v24, %v2909_v37  ;;  %v3831_v24 = vld [vmem:[%s3418_s28 + $0x1c] ss:$12 sps:$4 sm:$0xff]  }
 0x4f3   : > { %v2913_v26 = vpop.eup %2912 }
 0x4f4   : > { %v1544_v47 = vsub.f32 %v3770_v17, %v2913_v26  ;;  %v1545_v52 = vmul.f32 %v2911_v33, %v1543_v61  ;;  %v2915_v2 = vpop.eup %2914  ;;  %v3839_v17 = vld [vmem:[%s3418_s28 + $0x18] ss:$12 sps:$4 sm:$0xff]  }
 0x4f6   : > { %v1546_v15 = vmul.f32 %v2915_v2, %v1544_v47  ;;  %v3819_v30 = vadd.f32 %v2909_v37, %v1545_v52  ;;  %v3890_v52 = vld [vmem:[%s3418_s28 + $0x8] ss:$12 sps:$4 sm:$0xff]   ;;  %v3900_v2 = vld [vmem:[%s3418_s28 + $0x20] ss:$12 sps:$4 sm:$0xff]  }
 0x4f8   : > { %v3821_v19 = vadd.f32 %v2913_v26, %v1546_v15  ;;  %v3904_v15 = vld [vmem:[%s3418_s28 + $0x34] ss:$12 sps:$4 sm:$0xff]  }
 0x4fa   : > { %v1549_v60 = vpack.c.bf16 %v3821_v19, %v3819_v30 }
 0x4fc   : > { %1551 = vst [vmem:[#allocation2 + $0x18] sm:$0xff] %v1549_v60  ;;  %1594 = vmatmul.mubr.bf16.vlgmr.msra.gmra.mrb[16].mxu0 %v1549_v60  ;;  %2560 = vmatmul.mubr.bf16.vlgmr.msra.gmra.mrb[32].mxu1 %v1549_v60  ;;  %v3917_v60 = vld [vmem:[%s3418_s28 + $0x4c] ss:$12 sps:$4 sm:$0xff]  }
 0x4fd   : > { %1700 = vmatpush1.bf16.msra.mxu0 %v3826_v4  ;;  %2564 = vmatpush3.bf16.msra.mxu1 %v3493_v48 }
 0x4fe   : > { %1701 = vmatprep.subr.bf16.mxu0 %v3831_v24  ;;  %2565 = vmatprep.subr.bf16.mxu1 %v4113_v13 }
 0x4ff   : > { %1731 = vmatprep.mubr.bf16.mxu0 %v4114_v22  ;;  %2579 = vmatprep.mubr.msk.bf16.mxu1 %vm3188_vm0, %v4113_v13 }
 0x501   : > { %1702 = vmatpush1.bf16.msra.mxu0 %v3839_v17  ;;  %2566 = vmatpush3.bf16.msra.mxu1 %v3506_v51 }
 0x502   : > { %1703 = vmatprep.subr.bf16.mxu0 %v3462_v36  ;;  %2567 = vmatprep.subr.bf16.mxu1 %v4113_v13  ;;  %v3868_v36 = vld [vmem:[%s3418_s28 + $0x4] ss:$12 sps:$4 sm:$0xff]  }
 0x505   : > { %1704 = vmatpush1.bf16.msra.mxu0 %v3467_v39  ;;  %2568 = vmatpush3.bf16.msra.mxu1 %v3519_v55 }
 0x506   : > { %1705 = vmatprep.subr.bf16.mxu0 %v3471_v40  ;;  %2569 = vmatprep.subr.bf16.mxu1 %v4113_v13 }
 0x509   : > { %1706 = vmatpush1.bf16.msra.mxu0 %v3477_v42  ;;  %2570 = vmatpush3.bf16.msra.mxu1 %v3530_v58 }
 0x50a   : > { %1707 = vmatprep.subr.bf16.mxu0 %v3481_v43  ;;  %2571 = vmatprep.subr.bf16.mxu1 %v4113_v13 }
 0x50d   : > { %1708 = vmatpush1.bf16.msra.mxu0 %v3485_v45  ;;  %2572 = vmatpush3.bf16.msra.mxu1 %v3537_v59 }
 0x50e   : > { %1709 = vmatprep.subr.bf16.mxu0 %v3489_v46  ;;  %2573 = vmatprep.subr.bf16.mxu1 %v4113_v13 }
 0x511   : > { %1710 = vmatpush1.bf16.msra.mxu0 %v3498_v49  ;;  %2574 = vmatpush3.bf16.msra.mxu1 %v3543_v62 }
 0x512   : > { %1711 = vmatprep.subr.bf16.mxu0 %v3502_v50  ;;  %2575 = vmatprep.subr.bf16.mxu1 %v4113_v13 }
 0x515   : > { %1712 = vmatpush1.bf16.msra.mxu0 %v3511_v53  ;;  %2576 = vmatpush3.bf16.msra.mxu1 %v3548_v63 }
 0x516   : > { %1713 = vmatprep.subr.bf16.mxu0 %v3515_v54  ;;  %2577 = vmatprep.subr.bf16.mxu1 %v4113_v13 }
 0x519   : > { %1714 = vmatpush1.bf16.msra.mxu0 %v3525_v56  ;;  %2578 = vmatpush3.bf16.msra.mxu1 %v3554_v1 }
 0x51a   : > { %1837 = vmatprep.subr.bf16.mxu0 %v3868_v36  ;;  %2583 = vmatprep.subr.bf16.mxu1 %v4113_v13 }
 0x5cf   : > { %v1595_v39 = vpop.f32.mrb[16].mxu0  ;;  %v1638_v40 = vpop.f32.mrb[32].mxu1 }
 0x5d0   : > { %v2639_v42 = vadd.f32 %v1595_v39, %v3649_v7  ;;  %v1597_v43 = vpop.f32.mrb[17].mxu0  ;;  %v2561_v45 = vpop.f32.mrb[33].mxu1  ;;  %v1673_v5 = vadd.f32 %v3658_v14, %v1638_v40  ;;  %v3922_v39 = vld [vmem:[%s3418_s28 + $0x48] ss:$12 sps:$4 sm:$0xff]   ;;  %v3926_v40 = vld [vmem:[%s3418_s28 + $0x50] ss:$12 sps:$4 sm:$0xff]  }
 0x5d1   : > { %v1599_v46 = vpop.f32.mrb[18].mxu0  ;;  %v1641_v48 = vpop.f32.mrb[34].mxu1  ;;  %v2640_v55 = vadd.f32 %v1597_v43, %v3653_v28  ;;  %v3935_v43 = vld [vmem:[%s3418_s28 + $0x60] ss:$12 sps:$4 sm:$0xff]   ;;  %v3939_v45 = vld [vmem:[%s3418_s28 + $0x68] ss:$12 sps:$4 sm:$0xff]  }
 0x5d2   : > { %v2314_v49 = vmul.f32 -1.442695, %v2639_v42  ;;  %v2641_v50 = vadd.f32 %v1599_v46, %v3649_v7  ;;  %v1601_v51 = vpop.f32.mrb[19].mxu0  ;;  %v2562_v53 = vpop.f32.mrb[35].mxu1  ;;  %v1674_v0 = vadd.f32 %v3658_v14, %v1641_v48  ;;  %v3930_v42 = vld [vmem:[%s3418_s28 + $0x64] ss:$12 sps:$4 sm:$0xff]  }
 0x5d3   : > { %v2642_v56 = vadd.f32 %v1601_v51, %v3653_v28  ;;  %v2316_v58 = vmul.f32 -1.442695, %v2640_v55  ;;  %v3943_v46 = vld [vmem:[%s3418_s28 + $0x7c] ss:$12 sps:$4 sm:$0xff]   ;;  %v3948_v48 = vld [vmem:[%s3418_s28 + $0x78] ss:$12 sps:$4 sm:$0xff]  }
 0x5d4   : > { %2916 = vpow2.f32 %v2314_v49  ;;  %v2315_v54 = vmul.f32 -1.442695, %v2641_v50  ;;  %v3952_v49 = vld [vmem:[%s3418_s28 + $0x80] ss:$12 sps:$4 sm:$0xff]   ;;  %v3961_v51 = vld [vmem:[%s3418_s28 + $0x90] ss:$12 sps:$4 sm:$0xff]  }
 0x5d5   : > { %v2317_v62 = vmul.f32 -1.442695, %v2642_v56  ;;  %v3956_v50 = vld [vmem:[%s3418_s28 + $0x94] ss:$12 sps:$4 sm:$0xff]   ;;  %v3965_v53 = vld [vmem:[%s3418_s28 + $0x98] ss:$12 sps:$4 sm:$0xff]  }
 0x5d6   : > { %2918 = vpow2.f32 %v2315_v54  ;;  %v3969_v54 = vld [vmem:[%s3418_s28 + $0xac] ss:$12 sps:$4 sm:$0xff]   ;;  %v3974_v55 = vld [vmem:[%s3418_s28 + $0xa8] ss:$12 sps:$4 sm:$0xff]   ;;  %v3978_v56 = vld [vmem:[%s3418_s28 + $0xb0] ss:$12 sps:$4 sm:$0xff]  }
 0x5d7   : > { %2920 = vpow2.f32 %v2316_v58 }
 0x5de   : > { %v2917_v59 = vpop.eup %2916 }
 0x5df   : > { %v1653_v63 = vadd.f32 1.0, %v2917_v59 }
 0x5e0   : > { %v2919_v1 = vpop.eup %2918 }
 0x5e1   : > { %2922 = vrcp.f32 %v1653_v63  ;;  %v1654_v11 = vadd.f32 1.0, %v2919_v1  ;;  %v2921_v9 = vpop.eup %2920 }
 0x5e2   : > { %2924 = vpow2.f32 %v2317_v62  ;;  %v1667_v3 = vadd.f32 1.0, %v2921_v9 }
 0x5e3   : > { %2926 = vrcp.f32 %v1654_v11 }
 0x5eb   : > { %v2923_v20 = vpop.eup %2922 }
 0x5ec   : > { %v2925_v18 = vpop.eup %2924  ;;  %v1675_v16 = vmul.f32 %v2923_v20, %v1673_v5 }
 0x5ed   : > { %v2927_v6 = vpop.eup %2926  ;;  %v1668_v32 = vadd.f32 1.0, %v2925_v18 }
 0x5ee   : > { %v1677_v41 = vadd.f32 %v1675_v16, %v3629_v25  ;;  %v1676_v10 = vmul.f32 %v2927_v6, %v1674_v0 }
 0x5f0   : > { %2928 = vtanh.f32 %v1677_v41  ;;  %v1678_v21 = vadd.f32 %v1676_v10, %v3635_v29 }
 0x5f1   : > { %2930 = vrcp.f32 %v1667_v3 }
 0x5f2   : > { %2932 = vtanh.f32 %v1678_v21 }
 0x5f3   : > { %2934 = vrcp.f32 %v1668_v32 }
 0x5fa   : > { %v2929_v35 = vpop.eup %2928 }
 0x5fb   : > { %v2931_v31 = vpop.eup %2930  ;;  %v1681_v8 = vsub.f32 %v3819_v30, %v2929_v35  ;;  %v3909_v30 = vld [vmem:[%s3418_s28 + $0x30] ss:$12 sps:$4 sm:$0xff]  }
 0x5fc   : > { %v2933_v12 = vpop.eup %2932 }
 0x5fd   : > { %v1682_v37 = vsub.f32 %v3821_v19, %v2933_v12  ;;  %v1683_v33 = vmul.f32 %v2931_v31, %v1681_v8  ;;  %v2935_v61 = vpop.eup %2934  ;;  %v3913_v19 = vld [vmem:[%s3418_s28 + $0x38] ss:$12 sps:$4 sm:$0xff]  }
 0x5ff   : > { %v1684_v25 = vmul.f32 %v2935_v61, %v1682_v37  ;;  %v3882_v26 = vadd.f32 %v2929_v35, %v1683_v33 }
 0x601   : > { %v3884_v29 = vadd.f32 %v2933_v12, %v1684_v25 }
 0x603   : > { %v1687_v47 = vpack.c.bf16 %v3884_v29, %v3882_v26 }
 0x605   : > { %1689 = vst [vmem:[#allocation2 + $0x20] sm:$0xff] %v1687_v47  ;;  %1732 = vmatmul.mubr.bf16.vlgmr.msra.gmra.mrb[20].mxu0 %v1687_v47  ;;  %2580 = vmatmul.mubr.bf16.vlgmr.msra.gmra.mrb[36].mxu1 %v1687_v47 }
 0x606   : > { %1838 = vmatpush1.bf16.msra.mxu0 %v3826_v4  ;;  %2584 = vmatpush3.bf16.msra.mxu1 %v3890_v52 }
 0x607   : > { %1839 = vmatprep.subr.bf16.mxu0 %v3831_v24  ;;  %2585 = vmatprep.subr.bf16.mxu1 %v4113_v13 }
 0x608   : > { %1869 = vmatprep.mubr.bf16.mxu0 %v4114_v22  ;;  %2599 = vmatprep.mubr.msk.bf16.mxu1 %vm3188_vm0, %v4113_v13 }
 0x60a   : > { %1840 = vmatpush1.bf16.msra.mxu0 %v3839_v17  ;;  %2586 = vmatpush3.bf16.msra.mxu1 %v3900_v2 }
 0x60b   : > { %1841 = vmatprep.subr.bf16.mxu0 %v3904_v15  ;;  %2587 = vmatprep.subr.bf16.mxu1 %v4113_v13 }
 0x60e   : > { %1842 = vmatpush1.bf16.msra.mxu0 %v3909_v30  ;;  %2588 = vmatpush3.bf16.msra.mxu1 %v3913_v19 }
 0x60f   : > { %1843 = vmatprep.subr.bf16.mxu0 %v3917_v60  ;;  %2589 = vmatprep.subr.bf16.mxu1 %v4113_v13 }
 0x612   : > { %1844 = vmatpush1.bf16.msra.mxu0 %v3922_v39  ;;  %2590 = vmatpush3.bf16.msra.mxu1 %v3926_v40 }
 0x613   : > { %1845 = vmatprep.subr.bf16.mxu0 %v3930_v42  ;;  %2591 = vmatprep.subr.bf16.mxu1 %v4113_v13 }
 0x616   : > { %1846 = vmatpush1.bf16.msra.mxu0 %v3935_v43  ;;  %2592 = vmatpush3.bf16.msra.mxu1 %v3939_v45 }
 0x617   : > { %1847 = vmatprep.subr.bf16.mxu0 %v3943_v46  ;;  %2593 = vmatprep.subr.bf16.mxu1 %v4113_v13 }
 0x61a   : > { %1848 = vmatpush1.bf16.msra.mxu0 %v3948_v48  ;;  %2594 = vmatpush3.bf16.msra.mxu1 %v3952_v49 }
 0x61b   : > { %1849 = vmatprep.subr.bf16.mxu0 %v3956_v50  ;;  %2595 = vmatprep.subr.bf16.mxu1 %v4113_v13 }
 0x61e   : > { %1850 = vmatpush1.bf16.msra.mxu0 %v3961_v51  ;;  %2596 = vmatpush3.bf16.msra.mxu1 %v3965_v53 }
 0x61f   : > { %1851 = vmatprep.subr.bf16.mxu0 %v3969_v54  ;;  %2597 = vmatprep.subr.bf16.mxu1 %v4113_v13 }
 0x622   : > { %1852 = vmatpush1.bf16.msra.mxu0 %v3974_v55  ;;  %2598 = vmatpush3.bf16.msra.mxu1 %v3978_v56 }
 0x623   : > { %1975 = vmatprep.subr.bf16.mxu0 %v3868_v36  ;;  %2603 = vmatprep.subr.bf16.mxu1 %v4113_v13 }
 0x6d8   : > { %v1733_v58 = vpop.f32.mrb[20].mxu0  ;;  %v1776_v59 = vpop.f32.mrb[36].mxu1 }
 0x6d9   : > { %v2643_v62 = vadd.f32 %v1733_v58, %v3649_v7  ;;  %v1735_v63 = vpop.f32.mrb[21].mxu0  ;;  %v2581_v1 = vpop.f32.mrb[37].mxu1  ;;  %v1811_v8 = vadd.f32 %v3658_v14, %v1776_v59 }
 0x6da   : > { %v1737_v11 = vpop.f32.mrb[22].mxu0  ;;  %v1779_v9 = vpop.f32.mrb[38].mxu1  ;;  %v2644_v36 = vadd.f32 %v1735_v63, %v3653_v28 }
 0x6db   : > { %v2318_v5 = vmul.f32 -1.442695, %v2643_v62  ;;  %v2645_v20 = vadd.f32 %v1737_v11, %v3649_v7  ;;  %v1739_v18 = vpop.f32.mrb[23].mxu0  ;;  %v2582_v16 = vpop.f32.mrb[39].mxu1  ;;  %v1812_v61 = vadd.f32 %v3658_v14, %v1779_v9 }
 0x6dc   : > { %v2646_v6 = vadd.f32 %v1739_v18, %v3653_v28  ;;  %v2320_v3 = vmul.f32 -1.442695, %v2644_v36 }
 0x6dd   : > { %2936 = vpow2.f32 %v2318_v5  ;;  %v2319_v0 = vmul.f32 -1.442695, %v2645_v20 }
 0x6de   : > { %v2321_v10 = vmul.f32 -1.442695, %v2646_v6 }
 0x6df   : > { %2938 = vpow2.f32 %v2319_v0 }
 0x6e0   : > { %2940 = vpow2.f32 %v2320_v3 }
 0x6e7   : > { %v2937_v41 = vpop.eup %2936 }
 0x6e8   : > { %v1791_v21 = vadd.f32 1.0, %v2937_v41 }
 0x6e9   : > { %v2939_v32 = vpop.eup %2938 }
 0x6ea   : > { %2942 = vrcp.f32 %v1791_v21  ;;  %v1792_v35 = vadd.f32 1.0, %v2939_v32  ;;  %v2941_v31 = vpop.eup %2940 }
 0x6eb   : > { %2944 = vpow2.f32 %v2321_v10  ;;  %v1805_v47 = vadd.f32 1.0, %v2941_v31 }
 0x6ec   : > { %2946 = vrcp.f32 %v1792_v35 }
 0x6f4   : > { %v2943_v12 = vpop.eup %2942 }
 0x6f5   : > { %v2945_v37 = vpop.eup %2944  ;;  %v1813_v33 = vmul.f32 %v2943_v12, %v1811_v8 }
 0x6f6   : > { %v2947_v25 = vpop.eup %2946  ;;  %v1806_v1 = vadd.f32 1.0, %v2945_v37 }
 0x6f7   : > { %v1815_v58 = vadd.f32 %v1813_v33, %v3626_v23  ;;  %v1814_v62 = vmul.f32 %v2947_v25, %v1812_v61 }
 0x6f9   : > { %2948 = vtanh.f32 %v1815_v58  ;;  %v1816_v63 = vadd.f32 %v1814_v62, %v3632_v27 }
 0x6fa   : > { %2950 = vrcp.f32 %v1805_v47 }
 0x6fb   : > { %2952 = vtanh.f32 %v1816_v63 }
 0x6fc   : > { %2954 = vrcp.f32 %v1806_v1 }
 0x703   : > { %v2949_v11 = vpop.eup %2948 }
 0x704   : > { %v2951_v5 = vpop.eup %2950  ;;  %v1819_v59 = vsub.f32 %v3882_v26, %v2949_v11 }
 0x705   : > { %v2953_v20 = vpop.eup %2952 }
 0x706   : > { %v1820_v18 = vsub.f32 %v3884_v29, %v2953_v20  ;;  %v1821_v14 = vmul.f32 %v2951_v5, %v1819_v59  ;;  %v2955_v9 = vpop.eup %2954 }
 0x708   : > { %v1822_v16 = vmul.f32 %v2955_v9, %v1820_v18  ;;  %v3993_v0 = vadd.f32 %v2949_v11, %v1821_v14 }
 0x70a   : > { %v3995_v23 = vadd.f32 %v2953_v20, %v1822_v16 }
 0x70c   : > { %v1825_v27 = vpack.c.bf16 %v3995_v23, %v3993_v0 }
 0x70e   : > { %1827 = vst [vmem:[#allocation2 + $0x28] sm:$0xff] %v1825_v27  ;;  %1870 = vmatmul.mubr.bf16.vlgmr.msra.gmra.mrb[24].mxu0 %v1825_v27  ;;  %2600 = vmatmul.mubr.bf16.vlgmr.msra.gmra.mrb[40].mxu1 %v1825_v27 }
 0x70f   : > { %1976 = vmatpush1.bf16.msra.mxu0 %v3826_v4  ;;  %2604 = vmatpush3.bf16.msra.mxu1 %v3890_v52 }
 0x710   : > { %1977 = vmatprep.subr.bf16.mxu0 %v3831_v24  ;;  %2605 = vmatprep.subr.bf16.mxu1 %v4113_v13 }
 0x711   : > { %2007 = vmatprep.mubr.bf16.mxu0 %v4114_v22  ;;  %2619 = vmatprep.mubr.msk.bf16.mxu1 %vm3188_vm0, %v4113_v13 }
 0x713   : > { %1978 = vmatpush1.bf16.msra.mxu0 %v3839_v17  ;;  %2606 = vmatpush3.bf16.msra.mxu1 %v3900_v2 }
 0x714   : > { %1979 = vmatprep.subr.bf16.mxu0 %v3904_v15  ;;  %2607 = vmatprep.subr.bf16.mxu1 %v4113_v13 }
 0x717   : > { %1980 = vmatpush1.bf16.msra.mxu0 %v3909_v30  ;;  %2608 = vmatpush3.bf16.msra.mxu1 %v3913_v19 }
 0x718   : > { %1981 = vmatprep.subr.bf16.mxu0 %v3917_v60  ;;  %2609 = vmatprep.subr.bf16.mxu1 %v4113_v13 }
 0x71b   : > { %1982 = vmatpush1.bf16.msra.mxu0 %v3922_v39  ;;  %2610 = vmatpush3.bf16.msra.mxu1 %v3926_v40 }
 0x71c   : > { %1983 = vmatprep.subr.bf16.mxu0 %v3930_v42  ;;  %2611 = vmatprep.subr.bf16.mxu1 %v4113_v13 }
 0x71f   : > { %1984 = vmatpush1.bf16.msra.mxu0 %v3935_v43  ;;  %2612 = vmatpush3.bf16.msra.mxu1 %v3939_v45 }
 0x720   : > { %1985 = vmatprep.subr.bf16.mxu0 %v3943_v46  ;;  %2613 = vmatprep.subr.bf16.mxu1 %v4113_v13 }
 0x723   : > { %1986 = vmatpush1.bf16.msra.mxu0 %v3948_v48  ;;  %2614 = vmatpush3.bf16.msra.mxu1 %v3952_v49 }
 0x724   : > { %1987 = vmatprep.subr.bf16.mxu0 %v3956_v50  ;;  %2615 = vmatprep.subr.bf16.mxu1 %v4113_v13  ;;  %v3020_v50 = vld [vmem:[%s3411_s23] ss:$0 sm:$0xff] }
 0x727   : > { %1988 = vmatpush1.bf16.msra.mxu0 %v3961_v51  ;;  %2616 = vmatpush3.bf16.msra.mxu1 %v3965_v53 }
 0x728   : > { %1989 = vmatprep.subr.bf16.mxu0 %v3969_v54  ;;  %2617 = vmatprep.subr.bf16.mxu1 %v4113_v13 }
 0x72b   : > { %1990 = vmatpush1.bf16.msra.mxu0 %v3974_v55  ;;  %2618 = vmatpush3.bf16.msra.mxu1 %v3978_v56 }
 0x7e1   : > { %v1871_v22 = vpop.f32.mrb[24].mxu0  ;;  %v1914_v4 = vpop.f32.mrb[40].mxu1 }
 0x7e2   : > { %v2647_v24 = vadd.f32 %v1871_v22, %v3649_v7  ;;  %v1873_v17 = vpop.f32.mrb[25].mxu0  ;;  %v2601_v26 = vpop.f32.mrb[41].mxu1  ;;  %v1949_v51 = vadd.f32 %v3020_v50, %v1914_v4 }
 0x7e3   : > { %v1875_v29 = vpop.f32.mrb[26].mxu0  ;;  %v1917_v52 = vpop.f32.mrb[42].mxu1  ;;  %v2648_v60 = vadd.f32 %v1873_v17, %v3653_v28 }
 0x7e4   : > { %v2322_v2 = vmul.f32 -1.442695, %v2647_v24  ;;  %v2649_v15 = vadd.f32 %v1875_v29, %v3649_v7  ;;  %v1877_v30 = vpop.f32.mrb[27].mxu0  ;;  %v2602_v19 = vpop.f32.mrb[43].mxu1  ;;  %v1950_v56 = vadd.f32 %v3020_v50, %v1917_v52 }
 0x7e5   : > { %v2650_v39 = vadd.f32 %v1877_v30, %v3653_v28  ;;  %v2324_v40 = vmul.f32 -1.442695, %v2648_v60 }
 0x7e6   : > { %2956 = vpow2.f32 %v2322_v2  ;;  %v2323_v13 = vmul.f32 -1.442695, %v2649_v15 }
 0x7e7   : > { %v2325_v43 = vmul.f32 -1.442695, %v2650_v39 }
 0x7e8   : > { %2958 = vpow2.f32 %v2323_v13 }
 0x7e9   : > { %2960 = vpow2.f32 %v2324_v40 }
 0x7f0   : > { %v2957_v42 = vpop.eup %2956 }
 0x7f1   : > { %v1929_v45 = vadd.f32 1.0, %v2957_v42 }
 0x7f2   : > { %v2959_v46 = vpop.eup %2958 }
 0x7f3   : > { %2962 = vrcp.f32 %v1929_v45  ;;  %v1930_v48 = vadd.f32 1.0, %v2959_v46  ;;  %v2961_v49 = vpop.eup %2960 }
 0x7f4   : > { %2964 = vpow2.f32 %v2325_v43  ;;  %v1943_v6 = vadd.f32 1.0, %v2961_v49 }
 0x7f5   : > { %2966 = vrcp.f32 %v1930_v48 }
 0x7fd   : > { %v2963_v53 = vpop.eup %2962 }
 0x7fe   : > { %v2965_v54 = vpop.eup %2964  ;;  %v1951_v55 = vmul.f32 %v2963_v53, %v1949_v51 }
 0x7ff   : > { %v2967_v36 = vpop.eup %2966  ;;  %v1944_v21 = vadd.f32 1.0, %v2965_v54 }
 0x800   : > { %v1953_v3 = vadd.f32 %v1951_v55, %v3641_v38  ;;  %v1952_v41 = vmul.f32 %v2967_v36, %v1950_v56 }
 0x802   : > { %2968 = vtanh.f32 %v1953_v3  ;;  %v1954_v10 = vadd.f32 %v1952_v41, %v3647_v57 }
 0x803   : > { %2970 = vrcp.f32 %v1943_v6 }
 0x804   : > { %2972 = vtanh.f32 %v1954_v10 }
 0x805   : > { %2974 = vrcp.f32 %v1944_v21 }
 0x80c   : > { %v2969_v32 = vpop.eup %2968 }
 0x80d   : > { %v2971_v35 = vpop.eup %2970  ;;  %v1957_v31 = vsub.f32 %v3993_v0, %v2969_v32 }
 0x80e   : > { %v2973_v8 = vpop.eup %2972 }
 0x80f   : > { %v1958_v12 = vsub.f32 %v3995_v23, %v2973_v8  ;;  %v1959_v37 = vmul.f32 %v2971_v35, %v1957_v31  ;;  %v2975_v33 = vpop.eup %2974 }
 0x811   : > { %v1960_v61 = vmul.f32 %v2975_v33, %v1958_v12  ;;  %v1961_v25 = vadd.f32 %v2969_v32, %v1959_v37 }
 0x813   : > { %v1962_v38 = vadd.f32 %v2973_v8, %v1960_v61 }
 0x815   : > { %v1963_v47 = vpack.c.bf16 %v1962_v38, %v1961_v25 }
 0x817   : > { %1965 = vst [vmem:[#allocation2 + $0x30] sm:$0xff] %v1963_v47  ;;  %2008 = vmatmul.mubr.bf16.vlgmr.msra.gmra.mrb[28].mxu0 %v1963_v47  ;;  %2620 = vmatmul.mubr.bf16.vlgmr.msra.gmra.mrb[44].mxu1 %v1963_v47 }
 0x8ea   : > { %v2009_v57 = vpop.f32.mrb[28].mxu0  ;;  %v2052_v58 = vpop.f32.mrb[44].mxu1 }
 0x8eb   : > { %v2651_v62 = vadd.f32 %v2009_v57, %v3649_v7  ;;  %v2011_v63 = vpop.f32.mrb[29].mxu0  ;;  %v2621_v1 = vpop.f32.mrb[45].mxu1  ;;  %v2087_v26 = vadd.f32 %v3020_v50, %v2052_v58 }
 0x8ec   : > { %v2013_v11 = vpop.f32.mrb[30].mxu0  ;;  %v2055_v5 = vpop.f32.mrb[46].mxu1  ;;  %v2652_v16 = vadd.f32 %v2011_v63, %v3653_v28 }
 0x8ed   : > { %v2326_v59 = vmul.f32 -1.442695, %v2651_v62  ;;  %v2653_v20 = vadd.f32 %v2013_v11, %v3649_v7  ;;  %v2015_v18 = vpop.f32.mrb[31].mxu0  ;;  %v2622_v14 = vpop.f32.mrb[47].mxu1  ;;  %v2088_v15 = vadd.f32 %v3020_v50, %v2055_v5 }
 0x8ee   : > { %v2654_v0 = vadd.f32 %v2015_v18, %v3653_v28  ;;  %v2328_v23 = vmul.f32 -1.442695, %v2652_v16 }
 0x8ef   : > { %2976 = vpow2.f32 %v2326_v59  ;;  %v2327_v9 = vmul.f32 -1.442695, %v2653_v20 }
 0x8f0   : > { %v2329_v22 = vmul.f32 -1.442695, %v2654_v0 }
 0x8f1   : > { %2978 = vpow2.f32 %v2327_v9 }
 0x8f2   : > { %2980 = vpow2.f32 %v2328_v23 }
 0x8f9   : > { %v2977_v27 = vpop.eup %2976 }
 0x8fa   : > { %v2067_v4 = vadd.f32 1.0, %v2977_v27 }
 0x8fb   : > { %v2979_v24 = vpop.eup %2978 }
 0x8fc   : > { %2982 = vrcp.f32 %v2067_v4  ;;  %v2068_v17 = vadd.f32 1.0, %v2979_v24  ;;  %v2981_v7 = vpop.eup %2980 }
 0x8fd   : > { %2984 = vpow2.f32 %v2329_v22  ;;  %v2081_v19 = vadd.f32 1.0, %v2981_v7 }
 0x8fe   : > { %2986 = vrcp.f32 %v2068_v17 }
 0x906   : > { %v2983_v29 = vpop.eup %2982 }
 0x907   : > { %v2985_v52 = vpop.eup %2984  ;;  %v2089_v2 = vmul.f32 %v2983_v29, %v2087_v26 }
 0x908   : > { %v2987_v30 = vpop.eup %2986  ;;  %v2082_v39 = vadd.f32 1.0, %v2985_v52 }
 0x909   : > { %v2091_v28 = vadd.f32 %v2089_v2, %v3638_v34  ;;  %v2090_v13 = vmul.f32 %v2987_v30, %v2088_v15 }
 0x90b   : > { %2988 = vtanh.f32 %v2091_v28  ;;  %v2092_v60 = vadd.f32 %v2090_v13, %v3644_v44 }
 0x90c   : > { %2990 = vrcp.f32 %v2081_v19 }
 0x90d   : > { %2992 = vtanh.f32 %v2092_v60 }
 0x90e   : > { %2994 = vrcp.f32 %v2082_v39 }
 0x915   : > { %v2989_v40 = vpop.eup %2988 }
 0x916   : > { %v2991_v42 = vpop.eup %2990  ;;  %v2095_v43 = vsub.f32 %v1961_v25, %v2989_v40 }
 0x917   : > { %v2993_v45 = vpop.eup %2992 }
 0x918   : > { %v2096_v46 = vsub.f32 %v1962_v38, %v2993_v45  ;;  %v2097_v48 = vmul.f32 %v2991_v42, %v2095_v43  ;;  %v2995_v49 = vpop.eup %2994 }
 0x91a   : > { %v2098_v50 = vmul.f32 %v2995_v49, %v2096_v46  ;;  %v2099_v51 = vadd.f32 %v2989_v40, %v2097_v48 }
 0x91c   : > { %v2100_v34 = vadd.f32 %v2993_v45, %v2098_v50 }
 0x91e   : > { %v2101_v44 = vpack.c.bf16 %v2100_v34, %v2099_v51 }
 0x920   : > { %2103 = vst [vmem:[#allocation2 + $0x38] sm:$0xff] %v2101_v44  ;;  %2342 = vst [vmem:[#allocation10] sm:$0xff] %v2101_v44  }
 0x921   : > { %3122 = shalt.err (!%p3119_p3)
}
 0x922   : > { %s3123_s14 = scalar_lea.hbm %s4088_s5, 128 }
 0x923   : > { %p3124_p5 = scmp.ne.s32.totalorder %s4088_s5, %s3123_s14  ;;  %p3129_p12 = scmp.lt.u32.totalorder %s3123_s14, %s4088_s5 }
 0x925   : > { %p3125_p10 = pnand %p3124_p5, %p2719_p6 }
 0x927   : > { %p3126_p11 = pneg %p3125_p10 }
 0x929   : > { %p3131_p8 = pnand %p3129_p12, %p3126_p11 }
 0x92b   : > { %3134 = shalt.err (!%p3131_p8)
}
 0x92c   : > { %s3190_s26 = smov 64   ;;  %s3191_s11 = smov 4  }
 0x92d   : > { %2702 = dma.vmem_to_hbm [thread:$0]  (%p2719_p6), %s2120_s10, 128, %s4088_s5, [#allocation6], %s3190_s26, %s3190_s26, %s3191_s11  }
 0x92e   : > { %3160 = dma.done.wait (%p2719_p6), [#allocation6], 128  }
 0x92f   : > { %3162 = vsyncadd (%p2719_p6), [#allocation6], 4294967168 }
 0x930 PF: > { %p17_p13 = scmp.ge.s32.totalorder %s3243_s22, 4   ;;  %s4115_s18 = smov %s3169_s19 }
 0x931   : > { %s4116_s19 = smov %s3173_s20  ;;  %s4117_s20 = smov %s3253_s25 }
 0x932   : > { %s4118_s21 = smov %s3243_s22  ;;  %19 = sbr.rel (!%p17_p13) target bundleno = 5 (0x5), region = 118 }
 0x939   :  { %2135 = vsyncpa [#allocation5], 1 }
 0x93a   :  { %2137 = vsyncpa [#allocation5 + $0x1], 1 }
 0x93b   :  { %2138 = vsyncpa [#allocation8], 1 }
 0x93c   :  { %2140 = vsyncpa [#allocation8 + $0x1], 1 }
 0x93d   :  { %2141 = vsyncpa [#allocation6], 1 }
 0x93e   :  { %2143 = vsyncpa [#allocation6 + $0x1], 1 }

</bundles_post_ra>
